<compile_context>
chip_gen: v6e
topology: v6e:2x2x1
jax: 0.10.0
libtpu: 0.0.40
codegen_flags: <defaults>
</compile_context>

<pallas_src>
import math
import functools

import jax
import jax.numpy as jnp
from jax import lax
from jax.experimental import pallas as pl
from jax.experimental.pallas import tpu as pltpu

d_k = d_v = 64
d_model = 64
n_heads = 3
d_v_pad = 128                      # per-head V / fc padded to a full 128-lane tile
_SCALE = 1.0 / math.sqrt(d_k)


# ------------------------------ fused kernel ------------------------------- #

def _mha_fused_kernel(xq_ref, xk_ref, xv_ref, mask_ref,
                      wq_ref, wk_ref, wv_ref, wfc_ref,
                      out_ref, attn_ref,
                      k_scr, v_scr,
                      *, exp_bf16, cache_kv):
    """One (batch, q-tile) grid point.

    xq:   (1, TQ, d_model) f32   query rows for this tile (also the residual)
    xk/xv:(1, S,  d_model) f32   all key/value rows for this batch element
    mask: (1, TQ, S) int8        nonzero == masked
    wq/wk:(H, d_model, 64) bf16  per-head weights (scale folded into wq)
    wv:   (H, d_model, 128) bf16 per-head V weights, cols 64..127 zero
    wfc:  (H, 128, d_model) bf16 per-head out-proj weights, rows 64..127 zero
    out:  (1, TQ, d_model) f32   layernorm(fc(ctx) + residual)
    attn: (1, H, TQ, S)          softmax probabilities (bf16 by default)
    k_scr:(H, S, 64) bf16        K projection cached across q-tiles
    v_scr:(H, S, 128) bf16       V projection (+ ones column at col 64)
    """
    def project_kv():
        xk = xk_ref[0].astype(jnp.bfloat16)                       # (S, d_model)
        xv = xv_ref[0].astype(jnp.bfloat16)
        col = lax.broadcasted_iota(jnp.int32, (1, d_v_pad), 1)
        ones_col = jnp.where(col == d_v, 1.0, 0.0).astype(jnp.float32)  # (1, 128)
        for h in range(n_heads):                                  # static unroll
            kh = jnp.dot(xk, wk_ref[h], preferred_element_type=jnp.float32)
            k_scr[h] = kh.astype(jnp.bfloat16)                    # (S, 64)
            vh = jnp.dot(xv, wv_ref[h], preferred_element_type=jnp.float32)
            v_scr[h] = (vh + ones_col).astype(jnp.bfloat16)       # (S, 128), col 64 == 1

    if cache_kv:
        # q-tile axis is "arbitrary": qi runs 0..n_qt-1 sequentially per batch,
        # so K/V are projected once per batch element.
        @pl.when(pl.program_id(1) == 0)
        def _():
            project_kv()
    else:
        project_kv()

    xq = xq_ref[0]                                                # (TQ, d_model) f32 residual
    xq_bf = xq.astype(jnp.bfloat16)
    # additive mask bias: one int8->f32 convert + mul per step, reused by every head
    bias = mask_ref[0].astype(jnp.float32) * jnp.float32(-1e9)    # (TQ, S)

    out_acc = None
    for h in range(n_heads):                                      # static unroll over heads
        qh = jnp.dot(xq_bf, wq_ref[h],
                     preferred_element_type=jnp.float32).astype(jnp.bfloat16)   # (TQ, d_k)
        # scores: contract last dims of Q and K (no explicit transpose); scale is in wq
        s = lax.dot_general(qh, k_scr[h], (((1,), (1,)), ((), ())),
                            preferred_element_type=jnp.float32) + bias          # (TQ, S)

        m = jnp.max(s, axis=-1, keepdims=True)                    # numerically stable softmax
        if exp_bf16:
            p = jnp.exp((s - m).astype(jnp.bfloat16))             # bf16 EUP (v6e/v7x)
            p_mm = p
        else:
            p = jnp.exp(s - m)                                    # f32 (v5e: no bf16 EUP/VPU)
            p_mm = p.astype(jnp.bfloat16)

        # attn @ [V | 1 | 0]: the MXU produces both the context (cols 0..63) and the
        # softmax denominator (col 64) -> no XLU row-sum reduce.
        ctxd = jnp.dot(p_mm, v_scr[h], preferred_element_type=jnp.float32)      # (TQ, 128)
        inv = pl.reciprocal(ctxd[:, d_v:d_v + 1], approx=True)                  # (TQ, 1)
        # NOTE: approx reciprocal + bf16 matmul inputs -> ~1e-3 relative error vs f32 ref.
        attn_ref[0, h] = (p * inv.astype(p.dtype)).astype(attn_ref.dtype)

        # per-head output projection accumulated directly (rows 64.. of wfc are zero,
        # so the denominator column contributes nothing).
        contrib = jnp.dot((ctxd * inv).astype(jnp.bfloat16), wfc_ref[h],
                          preferred_element_type=jnp.float32)                   # (TQ, d_model)
        out_acc = contrib if out_acc is None else out_acc + contrib

    # residual + LayerNorm (PyTorch default init: weight=1, bias=0, eps=1e-5)
    res = out_acc + xq
    mu = jnp.mean(res, axis=-1, keepdims=True)
    var = jnp.mean((res - mu) ** 2, axis=-1, keepdims=True)
    out_ref[0] = (res - mu) * lax.rsqrt(var + 1e-5)


# ------------------------------ configuration ------------------------------ #

def _tpu_config():
    try:
        kind = jax.devices()[0].device_kind.lower()
    except Exception:
        kind = ""
    if "v7" in kind:
        # 64 MiB VMEM, 2 TensorCores/chip: smaller q-tiles, modest vmem limit
        return dict(gen="v7x", tq_cap=128, vmem=48 * 1024 * 1024, exp_bf16=True)
    if "v6" in kind:
        return dict(gen="v6e", tq_cap=512, vmem=96 * 1024 * 1024, exp_bf16=True)
    if "v5" in kind:
        # v5e: no bf16 VPU/EUP -> keep softmax elementwise math in f32
        return dict(gen="v5e", tq_cap=512, vmem=96 * 1024 * 1024, exp_bf16=False)
    return dict(gen="other", tq_cap=256, vmem=64 * 1024 * 1024, exp_bf16=False)


def _pick_tq(S, cap):
    """Largest multiple of 8 that divides S and is <= cap; falls back to S."""
    t = min(cap, S)
    t -= t % 8
    while t >= 8:
        if S % t == 0:
            return t
        t -= 8
    return S


# -------------------------------- wrapper ----------------------------------- #

def _mha_pallas(xq, xk, xv, mask_i8, wq_h, wk_h, wv_h, wfc_h, *,
                tq, vmem_bytes, dim_sem, exp_bf16, cache_kv, attn_dtype):
    B, S, _ = xq.shape
    n_qt = max(S // tq, 1)

    q_map = lambda b, qi: (b, qi, 0)
    kv_map = lambda b, qi: (b, 0, 0)
    w_map = lambda b, qi: (0, 0, 0)
    attn_map = lambda b, qi: (b, 0, qi, 0)

    kernel = functools.partial(_mha_fused_kernel,
                               exp_bf16=exp_bf16, cache_kv=cache_kv)

    out, attn = pl.pallas_call(
        kernel,
        out_shape=(
            jax.ShapeDtypeStruct((B, S, d_model), jnp.float32),
            jax.ShapeDtypeStruct((B, n_heads, S, S), attn_dtype),
        ),
        grid=(B, n_qt),
        in_specs=[
            pl.BlockSpec((1, tq, d_model), q_map),
            pl.BlockSpec((1, S, d_model), kv_map),
            pl.BlockSpec((1, S, d_model), kv_map),
            pl.BlockSpec((1, tq, S), q_map),
            pl.BlockSpec((n_heads, d_model, d_k), w_map),
            pl.BlockSpec((n_heads, d_model, d_k), w_map),
            pl.BlockSpec((n_heads, d_model, d_v_pad), w_map),
            pl.BlockSpec((n_heads, d_v_pad, d_model), w_map),
        ],
        out_specs=(
            pl.BlockSpec((1, tq, d_model), q_map),
            pl.BlockSpec((1, n_heads, tq, S), attn_map),
        ),
        scratch_shapes=[
            pltpu.VMEM((n_heads, S, d_k), jnp.bfloat16),       # cached K projection
            pltpu.VMEM((n_heads, S, d_v_pad), jnp.bfloat16),   # cached V projection + ones col
        ],
        compiler_params=pltpu.CompilerParams(
            dimension_semantics=dim_sem,
            vmem_limit_bytes=vmem_bytes),
    )(xq, xk, xv, mask_i8, wq_h, wk_h, wv_h, wfc_h)
    return out, attn


def multi_head_attention(params, input_Q, input_K, input_V, attn_mask, *,
                         attn_dtype=jnp.bfloat16):
    """Replicates MultiHeadAttention.forward.

    input_Q/K/V: (B, S, d_model) float32
    attn_mask:   (B, S, S) integer / bool (nonzero == masked)
    Returns (layernorm(fc(context) + residual), attn) with attn (B, H, S, S).
    attn is returned in bf16 by default (halves the dominant S^2 HBM writeback);
    pass attn_dtype=jnp.float32 for an f32 copy.
    """
    B, S, _ = input_Q.shape
    cfg = _tpu_config()

    tq = _pick_tq(S, cfg["tq_cap"])
    # v7x: make sure both TensorCores get work when batch == 1
    if cfg["gen"] == "v7x" and B == 1 and S // tq <= 1 and S >= 16:
        t2 = _pick_tq(S, S // 2)
        if t2 < S:
            tq = t2
    n_qt = max(S // tq, 1)

    q_parallel = (cfg["gen"] == "v7x" and B == 1 and n_qt > 1)
    dim_sem = ("parallel", "parallel") if q_parallel else ("parallel", "arbitrary")
    cache_kv = not q_parallel     # qi must be sequential-from-0 per batch to cache K/V

    # Per-head weight split (leading H axis -> no lane-crossing slices in-kernel),
    # scale folded into W_Q, bf16 cast, V/fc padded to 128 lanes for the fused
    # context + denominator matmul.
    f32, bf16 = jnp.float32, jnp.bfloat16
    wq = (params["W_Q"] * _SCALE).reshape(d_model, n_heads, d_k).transpose(1, 0, 2).astype(bf16)
    wk = params["W_K"].reshape(d_model, n_heads, d_k).transpose(1, 0, 2).astype(bf16)
    wv = params["W_V"].reshape(d_model, n_heads, d_v).transpose(1, 0, 2)
    wv = jnp.zeros((n_heads, d_model, d_v_pad), f32).at[:, :, :d_v].set(wv).astype(bf16)
    wfc = params["W_fc"].reshape(n_heads, d_v, d_model)
    wfc = jnp.zeros((n_heads, d_v_pad, d_model), f32).at[:, :d_v, :].set(wfc).astype(bf16)

    mask_i8 = (attn_mask != 0).astype(jnp.int8)   # 1/4 the HBM bytes of int32

    return _mha_pallas(input_Q, input_K, input_V, mask_i8, wq, wk, wv, wfc,
                       tq=tq, vmem_bytes=cfg["vmem"], dim_sem=dim_sem,
                       exp_bf16=cfg["exp_bf16"], cache_kv=cache_kv,
                       attn_dtype=attn_dtype)


def init_params(key):
    k1, k2, k3, k4 = jax.random.split(key, 4)
    bound = 1.0 / math.sqrt(d_model)
    bound_fc = 1.0 / math.sqrt(n_heads * d_v)
    return {
        # stored as (in, out) so forward is x @ W  (== PyTorch x @ W_lin.T)
        "W_Q": jax.random.uniform(k1, (d_model, d_k * n_heads), jnp.float32,
                                  -bound, bound),
        "W_K": jax.random.uniform(k2, (d_model, d_k * n_heads), jnp.float32,
                                  -bound, bound),
        "W_V": jax.random.uniform(k3, (d_model, d_v * n_heads), jnp.float32,
                                  -bound, bound),
        "W_fc": jax.random.uniform(k4, (n_heads * d_v, d_model), jnp.float32,
                                   -bound_fc, bound_fc),
    }


if __name__ == "__main__":
    B, S = 2, 8
    key = jax.random.PRNGKey(0)
    kp, kq, kk, kv, km = jax.random.split(key, 5)

    params = init_params(kp)
    input_Q = jax.random.normal(kq, (B, S, d_model), jnp.float32)
    input_K = jax.random.normal(kk, (B, S, d_model), jnp.float32)
    input_V = jax.random.normal(kv, (B, S, d_model), jnp.float32)
    # padding-style mask: last 2 key positions masked out
    attn_mask = jnp.zeros((B, S, S), jnp.int32).at[:, :, S - 2:].set(1)

    out, attn = jax.jit(functools.partial(multi_head_attention, params))(
        input_Q, input_K, input_V, attn_mask)
    jax.block_until_ready((out, attn))

    assert out.shape == (B, S, d_model)
    assert attn.shape == (B, n_heads, S, S)
    assert bool(jnp.all(jnp.isfinite(out)))
    assert bool(jnp.all(jnp.isfinite(attn.astype(jnp.float32))))
    print("KERNEL_OK")
</pallas_src>

<mosaic_0001>
module attributes {stable_mosaic.version = 11 : i64} {
  func.func @_mha_fused_kernel(%arg0: i32, %arg1: i32, %arg2: memref<1x8x64xf32, #tpu.memory_space<vmem>>, %arg3: memref<1x8x64xf32, #tpu.memory_space<vmem>>, %arg4: memref<1x8x64xf32, #tpu.memory_space<vmem>>, %arg5: memref<1x8x8xi8, #tpu.memory_space<vmem>>, %arg6: memref<3x64x64xbf16, #tpu.memory_space<vmem>>, %arg7: memref<3x64x64xbf16, #tpu.memory_space<vmem>>, %arg8: memref<3x64x128xbf16, #tpu.memory_space<vmem>>, %arg9: memref<3x128x64xbf16, #tpu.memory_space<vmem>>, %arg10: memref<1x8x64xf32, #tpu.memory_space<vmem>>, %arg11: memref<1x3x8x8xbf16, #tpu.memory_space<vmem>>, %arg12: memref<3x8x64xbf16, #tpu.memory_space<vmem>>, %arg13: memref<3x8x128xbf16, #tpu.memory_space<vmem>>) attributes {dimension_semantics = [#tpu.dimension_semantics<parallel>, #tpu.dimension_semantics<arbitrary>], iteration_bounds = array<i64: 2, 1>, scalar_prefetch = 0 : i64, scratch_operands = 2 : i64, tpu.core_type = #tpu.core_type<tc>, window_params = [{transform_indices = @transform_0, window_bounds = array<i64: 1, 8, 64>}, {transform_indices = @transform_1, window_bounds = array<i64: 1, 8, 64>}, {transform_indices = @transform_2, window_bounds = array<i64: 1, 8, 64>}, {transform_indices = @transform_3, window_bounds = array<i64: 1, 8, 8>}, {pipeline_mode = #tpu.pipeline_mode<synchronous>, transform_indices = @transform_4, window_bounds = array<i64: 3, 64, 64>}, {pipeline_mode = #tpu.pipeline_mode<synchronous>, transform_indices = @transform_5, window_bounds = array<i64: 3, 64, 64>}, {pipeline_mode = #tpu.pipeline_mode<synchronous>, transform_indices = @transform_6, window_bounds = array<i64: 3, 64, 128>}, {pipeline_mode = #tpu.pipeline_mode<synchronous>, transform_indices = @transform_7, window_bounds = array<i64: 3, 128, 64>}, {transform_indices = @transform_8, window_bounds = array<i64: 1, 8, 64>}, {transform_indices = @transform_9, window_bounds = array<i64: 1, 3, 8, 8>}]} {
    %c0_i32 = arith.constant 0 : i32
    %0 = arith.cmpi eq, %arg1, %c0_i32 : i32
    %1 = arith.extui %0 : i1 to i32
    %c0_i32_0 = arith.constant 0 : i32
    %2 = arith.cmpi ne, %1, %c0_i32_0 : i32
    scf.if %2 {
      %c0_75 = arith.constant 0 : index
      %c0_76 = arith.constant 0 : index
      %c0_77 = arith.constant 0 : index
      %128 = vector.load %arg3[%c0_75, %c0_76, %c0_77] : memref<1x8x64xf32, #tpu.memory_space<vmem>>, vector<1x8x64xf32>
      %129 = vector.shape_cast %128 : vector<1x8x64xf32> to vector<8x64xf32>
      %130 = arith.truncf %129 : vector<8x64xf32> to vector<8x64xbf16>
      %c0_78 = arith.constant 0 : index
      %c0_79 = arith.constant 0 : index
      %c0_80 = arith.constant 0 : index
      %131 = vector.load %arg4[%c0_78, %c0_79, %c0_80] : memref<1x8x64xf32, #tpu.memory_space<vmem>>, vector<1x8x64xf32>
      %132 = vector.shape_cast %131 : vector<1x8x64xf32> to vector<8x64xf32>
      %133 = arith.truncf %132 : vector<8x64xf32> to vector<8x64xbf16>
      %134 = tpu.iota {dimensions = array<i32: 1>} : vector<1x128xi32>
      %c64_i32 = arith.constant 64 : i32
      %135 = vector.broadcast %c64_i32 : i32 to vector<1x128xi32>
      %136 = arith.cmpi eq, %134, %135 : vector<1x128xi32>
      %cst_81 = arith.constant 1.000000e+00 : f32
      %cst_82 = arith.constant 0.000000e+00 : f32
      %137 = vector.broadcast %cst_81 : f32 to vector<1x128xf32>
      %138 = vector.broadcast %cst_82 : f32 to vector<1x128xf32>
      %139 = arith.select %136, %137, %138 : vector<1x128xi1>, vector<1x128xf32>
      %c0_83 = arith.constant 0 : index
      %c0_84 = arith.constant 0 : index
      %c0_85 = arith.constant 0 : index
      %140 = vector.load %arg7[%c0_83, %c0_84, %c0_85] : memref<3x64x64xbf16, #tpu.memory_space<vmem>>, vector<1x64x64xbf16>
      %141 = vector.shape_cast %140 : vector<1x64x64xbf16> to vector<64x64xbf16>
      %cst_86 = arith.constant dense<0.000000e+00> : vector<8x64xf32>
      %142 = tpu.matmul %130, %141, %cst_86 {dimension_numbers = #tpu.dot_dimension_numbers<[1], [0], [0], [1], [0, 0, 1, 1], [], []>} : vector<8x64xbf16>, vector<64x64xbf16>, vector<8x64xf32> -> vector<8x64xf32>
      %143 = arith.truncf %142 : vector<8x64xf32> to vector<8x64xbf16>
      %c0_87 = arith.constant 0 : index
      %c0_88 = arith.constant 0 : index
      %c0_89 = arith.constant 0 : index
      %144 = vector.load %arg12[%c0_87, %c0_88, %c0_89] : memref<3x8x64xbf16, #tpu.memory_space<vmem>>, vector<1x8x64xbf16>
      %145 = vector.shape_cast %144 : vector<1x8x64xbf16> to vector<8x64xbf16>
      %146 = vector.shape_cast %143 : vector<8x64xbf16> to vector<1x8x64xbf16>
      tpu.vector_store %arg12[%c0_87, %c0_88, %c0_89], %146 {strides = array<i32>} : memref<3x8x64xbf16, #tpu.memory_space<vmem>>, vector<1x8x64xbf16>,
      %c0_90 = arith.constant 0 : index
      %c0_91 = arith.constant 0 : index
      %c0_92 = arith.constant 0 : index
      %147 = vector.load %arg8[%c0_90, %c0_91, %c0_92] : memref<3x64x128xbf16, #tpu.memory_space<vmem>>, vector<1x64x128xbf16>
      %148 = vector.shape_cast %147 : vector<1x64x128xbf16> to vector<64x128xbf16>
      %cst_93 = arith.constant dense<0.000000e+00> : vector<8x128xf32>
      %149 = tpu.matmul %133, %148, %cst_93 {dimension_numbers = #tpu.dot_dimension_numbers<[1], [0], [0], [1], [0, 0, 1, 1], [], []>} : vector<8x64xbf16>, vector<64x128xbf16>, vector<8x128xf32> -> vector<8x128xf32>
      %150 = vector.broadcast %139 : vector<1x128xf32> to vector<8x128xf32>
      %151 = arith.addf %149, %150 : vector<8x128xf32>
      %152 = arith.truncf %151 : vector<8x128xf32> to vector<8x128xbf16>
      %c0_94 = arith.constant 0 : index
      %c0_95 = arith.constant 0 : index
      %c0_96 = arith.constant 0 : index
      %153 = vector.load %arg13[%c0_94, %c0_95, %c0_96] : memref<3x8x128xbf16, #tpu.memory_space<vmem>>, vector<1x8x128xbf16>
      %154 = vector.shape_cast %153 : vector<1x8x128xbf16> to vector<8x128xbf16>
      %155 = vector.shape_cast %152 : vector<8x128xbf16> to vector<1x8x128xbf16>
      tpu.vector_store %arg13[%c0_94, %c0_95, %c0_96], %155 {strides = array<i32>} : memref<3x8x128xbf16, #tpu.memory_space<vmem>>, vector<1x8x128xbf16>,
      %c1_97 = arith.constant 1 : index
      %c0_98 = arith.constant 0 : index
      %c0_99 = arith.constant 0 : index
      %156 = vector.load %arg7[%c1_97, %c0_98, %c0_99] : memref<3x64x64xbf16, #tpu.memory_space<vmem>>, vector<1x64x64xbf16>
      %157 = vector.shape_cast %156 : vector<1x64x64xbf16> to vector<64x64xbf16>
      %cst_100 = arith.constant dense<0.000000e+00> : vector<8x64xf32>
      %158 = tpu.matmul %130, %157, %cst_100 {dimension_numbers = #tpu.dot_dimension_numbers<[1], [0], [0], [1], [0, 0, 1, 1], [], []>} : vector<8x64xbf16>, vector<64x64xbf16>, vector<8x64xf32> -> vector<8x64xf32>
      %159 = arith.truncf %158 : vector<8x64xf32> to vector<8x64xbf16>
      %c1_101 = arith.constant 1 : index
      %c0_102 = arith.constant 0 : index
      %c0_103 = arith.constant 0 : index
      %160 = vector.load %arg12[%c1_101, %c0_102, %c0_103] : memref<3x8x64xbf16, #tpu.memory_space<vmem>>, vector<1x8x64xbf16>
      %161 = vector.shape_cast %160 : vector<1x8x64xbf16> to vector<8x64xbf16>
      %162 = vector.shape_cast %159 : vector<8x64xbf16> to vector<1x8x64xbf16>
      tpu.vector_store %arg12[%c1_101, %c0_102, %c0_103], %162 {strides = array<i32>} : memref<3x8x64xbf16, #tpu.memory_space<vmem>>, vector<1x8x64xbf16>,
      %c1_104 = arith.constant 1 : index
      %c0_105 = arith.constant 0 : index
      %c0_106 = arith.constant 0 : index
      %163 = vector.load %arg8[%c1_104, %c0_105, %c0_106] : memref<3x64x128xbf16, #tpu.memory_space<vmem>>, vector<1x64x128xbf16>
      %164 = vector.shape_cast %163 : vector<1x64x128xbf16> to vector<64x128xbf16>
      %cst_107 = arith.constant dense<0.000000e+00> : vector<8x128xf32>
      %165 = tpu.matmul %133, %164, %cst_107 {dimension_numbers = #tpu.dot_dimension_numbers<[1], [0], [0], [1], [0, 0, 1, 1], [], []>} : vector<8x64xbf16>, vector<64x128xbf16>, vector<8x128xf32> -> vector<8x128xf32>
      %166 = vector.broadcast %139 : vector<1x128xf32> to vector<8x128xf32>
      %167 = arith.addf %165, %166 : vector<8x128xf32>
      %168 = arith.truncf %167 : vector<8x128xf32> to vector<8x128xbf16>
      %c1_108 = arith.constant 1 : index
      %c0_109 = arith.constant 0 : index
      %c0_110 = arith.constant 0 : index
      %169 = vector.load %arg13[%c1_108, %c0_109, %c0_110] : memref<3x8x128xbf16, #tpu.memory_space<vmem>>, vector<1x8x128xbf16>
      %170 = vector.shape_cast %169 : vector<1x8x128xbf16> to vector<8x128xbf16>
      %171 = vector.shape_cast %168 : vector<8x128xbf16> to vector<1x8x128xbf16>
      tpu.vector_store %arg13[%c1_108, %c0_109, %c0_110], %171 {strides = array<i32>} : memref<3x8x128xbf16, #tpu.memory_space<vmem>>, vector<1x8x128xbf16>,
      %c2_111 = arith.constant 2 : index
      %c0_112 = arith.constant 0 : index
      %c0_113 = arith.constant 0 : index
      %172 = vector.load %arg7[%c2_111, %c0_112, %c0_113] : memref<3x64x64xbf16, #tpu.memory_space<vmem>>, vector<1x64x64xbf16>
      %173 = vector.shape_cast %172 : vector<1x64x64xbf16> to vector<64x64xbf16>
      %cst_114 = arith.constant dense<0.000000e+00> : vector<8x64xf32>
      %174 = tpu.matmul %130, %173, %cst_114 {dimension_numbers = #tpu.dot_dimension_numbers<[1], [0], [0], [1], [0, 0, 1, 1], [], []>} : vector<8x64xbf16>, vector<64x64xbf16>, vector<8x64xf32> -> vector<8x64xf32>
      %175 = arith.truncf %174 : vector<8x64xf32> to vector<8x64xbf16>
      %c2_115 = arith.constant 2 : index
      %c0_116 = arith.constant 0 : index
      %c0_117 = arith.constant 0 : index
      %176 = vector.load %arg12[%c2_115, %c0_116, %c0_117] : memref<3x8x64xbf16, #tpu.memory_space<vmem>>, vector<1x8x64xbf16>
      %177 = vector.shape_cast %176 : vector<1x8x64xbf16> to vector<8x64xbf16>
      %178 = vector.shape_cast %175 : vector<8x64xbf16> to vector<1x8x64xbf16>
      tpu.vector_store %arg12[%c2_115, %c0_116, %c0_117], %178 {strides = array<i32>} : memref<3x8x64xbf16, #tpu.memory_space<vmem>>, vector<1x8x64xbf16>,
      %c2_118 = arith.constant 2 : index
      %c0_119 = arith.constant 0 : index
      %c0_120 = arith.constant 0 : index
      %179 = vector.load %arg8[%c2_118, %c0_119, %c0_120] : memref<3x64x128xbf16, #tpu.memory_space<vmem>>, vector<1x64x128xbf16>
      %180 = vector.shape_cast %179 : vector<1x64x128xbf16> to vector<64x128xbf16>
      %cst_121 = arith.constant dense<0.000000e+00> : vector<8x128xf32>
      %181 = tpu.matmul %133, %180, %cst_121 {dimension_numbers = #tpu.dot_dimension_numbers<[1], [0], [0], [1], [0, 0, 1, 1], [], []>} : vector<8x64xbf16>, vector<64x128xbf16>, vector<8x128xf32> -> vector<8x128xf32>
      %182 = vector.broadcast %139 : vector<1x128xf32> to vector<8x128xf32>
      %183 = arith.addf %181, %182 : vector<8x128xf32>
      %184 = arith.truncf %183 : vector<8x128xf32> to vector<8x128xbf16>
      %c2_122 = arith.constant 2 : index
      %c0_123 = arith.constant 0 : index
      %c0_124 = arith.constant 0 : index
      %185 = vector.load %arg13[%c2_122, %c0_123, %c0_124] : memref<3x8x128xbf16, #tpu.memory_space<vmem>>, vector<1x8x128xbf16>
      %186 = vector.shape_cast %185 : vector<1x8x128xbf16> to vector<8x128xbf16>
      %187 = vector.shape_cast %184 : vector<8x128xbf16> to vector<1x8x128xbf16>
      tpu.vector_store %arg13[%c2_122, %c0_123, %c0_124], %187 {strides = array<i32>} : memref<3x8x128xbf16, #tpu.memory_space<vmem>>, vector<1x8x128xbf16>,
    } else {
    }
    %c0 = arith.constant 0 : index
    %c0_1 = arith.constant 0 : index
    %c0_2 = arith.constant 0 : index
    %3 = vector.load %arg2[%c0, %c0_1, %c0_2] : memref<1x8x64xf32, #tpu.memory_space<vmem>>, vector<1x8x64xf32>
    %4 = vector.shape_cast %3 : vector<1x8x64xf32> to vector<8x64xf32>
    %5 = arith.truncf %4 : vector<8x64xf32> to vector<8x64xbf16>
    %c0_3 = arith.constant 0 : index
    %c0_4 = arith.constant 0 : index
    %c0_5 = arith.constant 0 : index
    %6 = vector.load %arg5[%c0_3, %c0_4, %c0_5] : memref<1x8x8xi8, #tpu.memory_space<vmem>>, vector<1x8x8xi8>
    %7 = vector.shape_cast %6 : vector<1x8x8xi8> to vector<8x8xi8>
    %8 = arith.sitofp %7 : vector<8x8xi8> to vector<8x8xf32>
    %cst = arith.constant -1.000000e+09 : f32
    %9 = vector.broadcast %cst : f32 to vector<8x8xf32>
    %10 = arith.mulf %8, %9 : vector<8x8xf32>
    %c0_6 = arith.constant 0 : index
    %c0_7 = arith.constant 0 : index
    %c0_8 = arith.constant 0 : index
    %11 = vector.load %arg6[%c0_6, %c0_7, %c0_8] : memref<3x64x64xbf16, #tpu.memory_space<vmem>>, vector<1x64x64xbf16>
    %12 = vector.shape_cast %11 : vector<1x64x64xbf16> to vector<64x64xbf16>
    %cst_9 = arith.constant dense<0.000000e+00> : vector<8x64xf32>
    %13 = tpu.matmul %5, %12, %cst_9 {dimension_numbers = #tpu.dot_dimension_numbers<[1], [0], [0], [1], [0, 0, 1, 1], [], []>} : vector<8x64xbf16>, vector<64x64xbf16>, vector<8x64xf32> -> vector<8x64xf32>
    %14 = arith.truncf %13 : vector<8x64xf32> to vector<8x64xbf16>
    %c0_10 = arith.constant 0 : index
    %c0_11 = arith.constant 0 : index
    %c0_12 = arith.constant 0 : index
    %15 = vector.load %arg12[%c0_10, %c0_11, %c0_12] : memref<3x8x64xbf16, #tpu.memory_space<vmem>>, vector<1x8x64xbf16>
    %16 = vector.shape_cast %15 : vector<1x8x64xbf16> to vector<8x64xbf16>
    %cst_13 = arith.constant dense<0.000000e+00> : vector<8x8xf32>
    %17 = tpu.matmul %14, %16, %cst_13 {dimension_numbers = #tpu.dot_dimension_numbers<[1], [1], [0], [0], [0, 0, 1, 0], [], []>} : vector<8x64xbf16>, vector<8x64xbf16>, vector<8x8xf32> -> vector<8x8xf32>
    %18 = arith.addf %17, %10 : vector<8x8xf32>
    %cst_14 = arith.constant dense<0xFF800000> : vector<8xf32>
    %19 = vector.multi_reduction <maximumf>, %18, %cst_14 [1] : vector<8x8xf32> to vector<8xf32>
    %20 = vector.shape_cast %19 : vector<8xf32> to vector<8x1xf32>
    %21 = vector.broadcast %20 : vector<8x1xf32> to vector<8x8xf32>
    %22 = arith.subf %18, %21 : vector<8x8xf32>
    %23 = math.exp %22 : vector<8x8xf32>
    %24 = arith.truncf %23 : vector<8x8xf32> to vector<8x8xbf16>
    %c0_15 = arith.constant 0 : index
    %c0_16 = arith.constant 0 : index
    %c0_17 = arith.constant 0 : index
    %25 = vector.load %arg13[%c0_15, %c0_16, %c0_17] : memref<3x8x128xbf16, #tpu.memory_space<vmem>>, vector<1x8x128xbf16>
    %26 = vector.shape_cast %25 : vector<1x8x128xbf16> to vector<8x128xbf16>
    %cst_18 = arith.constant dense<0.000000e+00> : vector<8x128xf32>
    %27 = tpu.matmul %24, %26, %cst_18 {dimension_numbers = #tpu.dot_dimension_numbers<[1], [0], [0], [1], [0, 0, 1, 1], [], []>} : vector<8x8xbf16>, vector<8x128xbf16>, vector<8x128xf32> -> vector<8x128xf32>
    %28 = vector.extract_strided_slice %27 {offsets = [0, 64], sizes = [8, 1], strides = [1, 1]} : vector<8x128xf32> to vector<8x1xf32>
    %29 = tpu.reciprocal %28 {approx = true} : vector<8x1xf32> -> vector<8x1xf32>
    %30 = vector.broadcast %29 : vector<8x1xf32> to vector<8x8xf32>
    %31 = arith.mulf %23, %30 : vector<8x8xf32>
    %32 = arith.truncf %31 : vector<8x8xf32> to vector<8x8xbf16>
    %c0_19 = arith.constant 0 : index
    %c0_20 = arith.constant 0 : index
    %c0_21 = arith.constant 0 : index
    %c0_22 = arith.constant 0 : index
    %33 = vector.load %arg11[%c0_19, %c0_20, %c0_21, %c0_22] : memref<1x3x8x8xbf16, #tpu.memory_space<vmem>>, vector<1x1x8x8xbf16>
    %34 = vector.shape_cast %33 : vector<1x1x8x8xbf16> to vector<8x8xbf16>
    %35 = vector.shape_cast %32 : vector<8x8xbf16> to vector<1x1x8x8xbf16>
    tpu.vector_store %arg11[%c0_19, %c0_20, %c0_21, %c0_22], %35 {strides = array<i32>} : memref<1x3x8x8xbf16, #tpu.memory_space<vmem>>, vector<1x1x8x8xbf16>,
    %36 = vector.broadcast %29 : vector<8x1xf32> to vector<8x128xf32>
    %37 = arith.mulf %27, %36 : vector<8x128xf32>
    %38 = arith.truncf %37 : vector<8x128xf32> to vector<8x128xbf16>
    %c0_23 = arith.constant 0 : index
    %c0_24 = arith.constant 0 : index
    %c0_25 = arith.constant 0 : index
    %39 = vector.load %arg9[%c0_23, %c0_24, %c0_25] : memref<3x128x64xbf16, #tpu.memory_space<vmem>>, vector<1x128x64xbf16>
    %40 = vector.shape_cast %39 : vector<1x128x64xbf16> to vector<128x64xbf16>
    %cst_26 = arith.constant dense<0.000000e+00> : vector<8x64xf32>
    %41 = tpu.matmul %38, %40, %cst_26 {dimension_numbers = #tpu.dot_dimension_numbers<[1], [0], [0], [1], [0, 0, 1, 1], [], []>} : vector<8x128xbf16>, vector<128x64xbf16>, vector<8x64xf32> -> vector<8x64xf32>
    %c1 = arith.constant 1 : index
    %c0_27 = arith.constant 0 : index
    %c0_28 = arith.constant 0 : index
    %42 = vector.load %arg6[%c1, %c0_27, %c0_28] : memref<3x64x64xbf16, #tpu.memory_space<vmem>>, vector<1x64x64xbf16>
    %43 = vector.shape_cast %42 : vector<1x64x64xbf16> to vector<64x64xbf16>
    %cst_29 = arith.constant dense<0.000000e+00> : vector<8x64xf32>
    %44 = tpu.matmul %5, %43, %cst_29 {dimension_numbers = #tpu.dot_dimension_numbers<[1], [0], [0], [1], [0, 0, 1, 1], [], []>} : vector<8x64xbf16>, vector<64x64xbf16>, vector<8x64xf32> -> vector<8x64xf32>
    %45 = arith.truncf %44 : vector<8x64xf32> to vector<8x64xbf16>
    %c1_30 = arith.constant 1 : index
    %c0_31 = arith.constant 0 : index
    %c0_32 = arith.constant 0 : index
    %46 = vector.load %arg12[%c1_30, %c0_31, %c0_32] : memref<3x8x64xbf16, #tpu.memory_space<vmem>>, vector<1x8x64xbf16>
    %47 = vector.shape_cast %46 : vector<1x8x64xbf16> to vector<8x64xbf16>
    %cst_33 = arith.constant dense<0.000000e+00> : vector<8x8xf32>
    %48 = tpu.matmul %45, %47, %cst_33 {dimension_numbers = #tpu.dot_dimension_numbers<[1], [1], [0], [0], [0, 0, 1, 0], [], []>} : vector<8x64xbf16>, vector<8x64xbf16>, vector<8x8xf32> -> vector<8x8xf32>
    %49 = arith.addf %48, %10 : vector<8x8xf32>
    %cst_34 = arith.constant dense<0xFF800000> : vector<8xf32>
    %50 = vector.multi_reduction <maximumf>, %49, %cst_34 [1] : vector<8x8xf32> to vector<8xf32>
    %51 = vector.shape_cast %50 : vector<8xf32> to vector<8x1xf32>
    %52 = vector.broadcast %51 : vector<8x1xf32> to vector<8x8xf32>
    %53 = arith.subf %49, %52 : vector<8x8xf32>
    %54 = math.exp %53 : vector<8x8xf32>
    %55 = arith.truncf %54 : vector<8x8xf32> to vector<8x8xbf16>
    %c1_35 = arith.constant 1 : index
    %c0_36 = arith.constant 0 : index
    %c0_37 = arith.constant 0 : index
    %56 = vector.load %arg13[%c1_35, %c0_36, %c0_37] : memref<3x8x128xbf16, #tpu.memory_space<vmem>>, vector<1x8x128xbf16>
    %57 = vector.shape_cast %56 : vector<1x8x128xbf16> to vector<8x128xbf16>
    %cst_38 = arith.constant dense<0.000000e+00> : vector<8x128xf32>
    %58 = tpu.matmul %55, %57, %cst_38 {dimension_numbers = #tpu.dot_dimension_numbers<[1], [0], [0], [1], [0, 0, 1, 1], [], []>} : vector<8x8xbf16>, vector<8x128xbf16>, vector<8x128xf32> -> vector<8x128xf32>
    %59 = vector.extract_strided_slice %58 {offsets = [0, 64], sizes = [8, 1], strides = [1, 1]} : vector<8x128xf32> to vector<8x1xf32>
    %60 = tpu.reciprocal %59 {approx = true} : vector<8x1xf32> -> vector<8x1xf32>
    %61 = vector.broadcast %60 : vector<8x1xf32> to vector<8x8xf32>
    %62 = arith.mulf %54, %61 : vector<8x8xf32>
    %63 = arith.truncf %62 : vector<8x8xf32> to vector<8x8xbf16>
    %c0_39 = arith.constant 0 : index
    %c1_40 = arith.constant 1 : index
    %c0_41 = arith.constant 0 : index
    %c0_42 = arith.constant 0 : index
    %64 = vector.load %arg11[%c0_39, %c1_40, %c0_41, %c0_42] : memref<1x3x8x8xbf16, #tpu.memory_space<vmem>>, vector<1x1x8x8xbf16>
    %65 = vector.shape_cast %64 : vector<1x1x8x8xbf16> to vector<8x8xbf16>
    %66 = vector.shape_cast %63 : vector<8x8xbf16> to vector<1x1x8x8xbf16>
    tpu.vector_store %arg11[%c0_39, %c1_40, %c0_41, %c0_42], %66 {strides = array<i32>} : memref<1x3x8x8xbf16, #tpu.memory_space<vmem>>, vector<1x1x8x8xbf16>,
    %67 = vector.broadcast %60 : vector<8x1xf32> to vector<8x128xf32>
    %68 = arith.mulf %58, %67 : vector<8x128xf32>
    %69 = arith.truncf %68 : vector<8x128xf32> to vector<8x128xbf16>
    %c1_43 = arith.constant 1 : index
    %c0_44 = arith.constant 0 : index
    %c0_45 = arith.constant 0 : index
    %70 = vector.load %arg9[%c1_43, %c0_44, %c0_45] : memref<3x128x64xbf16, #tpu.memory_space<vmem>>, vector<1x128x64xbf16>
    %71 = vector.shape_cast %70 : vector<1x128x64xbf16> to vector<128x64xbf16>
    %cst_46 = arith.constant dense<0.000000e+00> : vector<8x64xf32>
    %72 = tpu.matmul %69, %71, %cst_46 {dimension_numbers = #tpu.dot_dimension_numbers<[1], [0], [0], [1], [0, 0, 1, 1], [], []>} : vector<8x128xbf16>, vector<128x64xbf16>, vector<8x64xf32> -> vector<8x64xf32>
    %73 = arith.addf %41, %72 : vector<8x64xf32>
    %c2 = arith.constant 2 : index
    %c0_47 = arith.constant 0 : index
    %c0_48 = arith.constant 0 : index
    %74 = vector.load %arg6[%c2, %c0_47, %c0_48] : memref<3x64x64xbf16, #tpu.memory_space<vmem>>, vector<1x64x64xbf16>
    %75 = vector.shape_cast %74 : vector<1x64x64xbf16> to vector<64x64xbf16>
    %cst_49 = arith.constant dense<0.000000e+00> : vector<8x64xf32>
    %76 = tpu.matmul %5, %75, %cst_49 {dimension_numbers = #tpu.dot_dimension_numbers<[1], [0], [0], [1], [0, 0, 1, 1], [], []>} : vector<8x64xbf16>, vector<64x64xbf16>, vector<8x64xf32> -> vector<8x64xf32>
    %77 = arith.truncf %76 : vector<8x64xf32> to vector<8x64xbf16>
    %c2_50 = arith.constant 2 : index
    %c0_51 = arith.constant 0 : index
    %c0_52 = arith.constant 0 : index
    %78 = vector.load %arg12[%c2_50, %c0_51, %c0_52] : memref<3x8x64xbf16, #tpu.memory_space<vmem>>, vector<1x8x64xbf16>
    %79 = vector.shape_cast %78 : vector<1x8x64xbf16> to vector<8x64xbf16>
    %cst_53 = arith.constant dense<0.000000e+00> : vector<8x8xf32>
    %80 = tpu.matmul %77, %79, %cst_53 {dimension_numbers = #tpu.dot_dimension_numbers<[1], [1], [0], [0], [0, 0, 1, 0], [], []>} : vector<8x64xbf16>, vector<8x64xbf16>, vector<8x8xf32> -> vector<8x8xf32>
    %81 = arith.addf %80, %10 : vector<8x8xf32>
    %cst_54 = arith.constant dense<0xFF800000> : vector<8xf32>
    %82 = vector.multi_reduction <maximumf>, %81, %cst_54 [1] : vector<8x8xf32> to vector<8xf32>
    %83 = vector.shape_cast %82 : vector<8xf32> to vector<8x1xf32>
    %84 = vector.broadcast %83 : vector<8x1xf32> to vector<8x8xf32>
    %85 = arith.subf %81, %84 : vector<8x8xf32>
    %86 = math.exp %85 : vector<8x8xf32>
    %87 = arith.truncf %86 : vector<8x8xf32> to vector<8x8xbf16>
    %c2_55 = arith.constant 2 : index
    %c0_56 = arith.constant 0 : index
    %c0_57 = arith.constant 0 : index
    %88 = vector.load %arg13[%c2_55, %c0_56, %c0_57] : memref<3x8x128xbf16, #tpu.memory_space<vmem>>, vector<1x8x128xbf16>
    %89 = vector.shape_cast %88 : vector<1x8x128xbf16> to vector<8x128xbf16>
    %cst_58 = arith.constant dense<0.000000e+00> : vector<8x128xf32>
    %90 = tpu.matmul %87, %89, %cst_58 {dimension_numbers = #tpu.dot_dimension_numbers<[1], [0], [0], [1], [0, 0, 1, 1], [], []>} : vector<8x8xbf16>, vector<8x128xbf16>, vector<8x128xf32> -> vector<8x128xf32>
    %91 = vector.extract_strided_slice %90 {offsets = [0, 64], sizes = [8, 1], strides = [1, 1]} : vector<8x128xf32> to vector<8x1xf32>
    %92 = tpu.reciprocal %91 {approx = true} : vector<8x1xf32> -> vector<8x1xf32>
    %93 = vector.broadcast %92 : vector<8x1xf32> to vector<8x8xf32>
    %94 = arith.mulf %86, %93 : vector<8x8xf32>
    %95 = arith.truncf %94 : vector<8x8xf32> to vector<8x8xbf16>
    %c0_59 = arith.constant 0 : index
    %c2_60 = arith.constant 2 : index
    %c0_61 = arith.constant 0 : index
    %c0_62 = arith.constant 0 : index
    %96 = vector.load %arg11[%c0_59, %c2_60, %c0_61, %c0_62] : memref<1x3x8x8xbf16, #tpu.memory_space<vmem>>, vector<1x1x8x8xbf16>
    %97 = vector.shape_cast %96 : vector<1x1x8x8xbf16> to vector<8x8xbf16>
    %98 = vector.shape_cast %95 : vector<8x8xbf16> to vector<1x1x8x8xbf16>
    tpu.vector_store %arg11[%c0_59, %c2_60, %c0_61, %c0_62], %98 {strides = array<i32>} : memref<1x3x8x8xbf16, #tpu.memory_space<vmem>>, vector<1x1x8x8xbf16>,
    %99 = vector.broadcast %92 : vector<8x1xf32> to vector<8x128xf32>
    %100 = arith.mulf %90, %99 : vector<8x128xf32>
    %101 = arith.truncf %100 : vector<8x128xf32> to vector<8x128xbf16>
    %c2_63 = arith.constant 2 : index
    %c0_64 = arith.constant 0 : index
    %c0_65 = arith.constant 0 : index
    %102 = vector.load %arg9[%c2_63, %c0_64, %c0_65] : memref<3x128x64xbf16, #tpu.memory_space<vmem>>, vector<1x128x64xbf16>
    %103 = vector.shape_cast %102 : vector<1x128x64xbf16> to vector<128x64xbf16>
    %cst_66 = arith.constant dense<0.000000e+00> : vector<8x64xf32>
    %104 = tpu.matmul %101, %103, %cst_66 {dimension_numbers = #tpu.dot_dimension_numbers<[1], [0], [0], [1], [0, 0, 1, 1], [], []>} : vector<8x128xbf16>, vector<128x64xbf16>, vector<8x64xf32> -> vector<8x64xf32>
    %105 = arith.addf %73, %104 : vector<8x64xf32>
    %106 = arith.addf %105, %4 : vector<8x64xf32>
    %cst_67 = arith.constant dense<0.000000e+00> : vector<8xf32>
    %107 = vector.multi_reduction <add>, %106, %cst_67 [1] : vector<8x64xf32> to vector<8xf32>
    %108 = vector.shape_cast %107 : vector<8xf32> to vector<8x1xf32>
    %cst_68 = arith.constant 6.400000e+01 : f32
    %109 = vector.broadcast %cst_68 : f32 to vector<8x1xf32>
    %110 = arith.divf %108, %109 : vector<8x1xf32>
    %111 = vector.broadcast %110 : vector<8x1xf32> to vector<8x64xf32>
    %112 = arith.subf %106, %111 : vector<8x64xf32>
    %113 = arith.mulf %112, %112 : vector<8x64xf32>
    %cst_69 = arith.constant dense<0.000000e+00> : vector<8xf32>
    %114 = vector.multi_reduction <add>, %113, %cst_69 [1] : vector<8x64xf32> to vector<8xf32>
    %115 = vector.shape_cast %114 : vector<8xf32> to vector<8x1xf32>
    %cst_70 = arith.constant 6.400000e+01 : f32
    %116 = vector.broadcast %cst_70 : f32 to vector<8x1xf32>
    %117 = arith.divf %115, %116 : vector<8x1xf32>
    %118 = vector.broadcast %110 : vector<8x1xf32> to vector<8x64xf32>
    %119 = arith.subf %106, %118 : vector<8x64xf32>
    %cst_71 = arith.constant 9.99999974E-6 : f32
    %120 = vector.broadcast %cst_71 : f32 to vector<8x1xf32>
    %121 = arith.addf %117, %120 : vector<8x1xf32>
    %122 = math.rsqrt %121 : vector<8x1xf32>
    %123 = vector.broadcast %122 : vector<8x1xf32> to vector<8x64xf32>
    %124 = arith.mulf %119, %123 : vector<8x64xf32>
    %c0_72 = arith.constant 0 : index
    %c0_73 = arith.constant 0 : index
    %c0_74 = arith.constant 0 : index
    %125 = vector.load %arg10[%c0_72, %c0_73, %c0_74] : memref<1x8x64xf32, #tpu.memory_space<vmem>>, vector<1x8x64xf32>
    %126 = vector.shape_cast %125 : vector<1x8x64xf32> to vector<8x64xf32>
    %127 = vector.shape_cast %124 : vector<8x64xf32> to vector<1x8x64xf32>
    tpu.vector_store %arg10[%c0_72, %c0_73, %c0_74], %127 {strides = array<i32>} : memref<1x8x64xf32, #tpu.memory_space<vmem>>, vector<1x8x64xf32>,
    return
  }
  func.func @transform_0(%arg0: i32, %arg1: i32) -> (i32, i32, i32) {
    %c0_i32 = arith.constant 0 : i32
    %c0_i32_0 = arith.constant 0 : i32
    return %arg0, %arg1, %c0_i32 : i32, i32, i32
  }
  func.func @transform_1(%arg0: i32, %arg1: i32) -> (i32, i32, i32) {
    %c0_i32 = arith.constant 0 : i32
    %c0_i32_0 = arith.constant 0 : i32
    %c0_i32_1 = arith.constant 0 : i32
    return %arg0, %c0_i32, %c0_i32_0 : i32, i32, i32
  }
  func.func @transform_2(%arg0: i32, %arg1: i32) -> (i32, i32, i32) {
    %c0_i32 = arith.constant 0 : i32
    %c0_i32_0 = arith.constant 0 : i32
    %c0_i32_1 = arith.constant 0 : i32
    return %arg0, %c0_i32, %c0_i32_0 : i32, i32, i32
  }
  func.func @transform_3(%arg0: i32, %arg1: i32) -> (i32, i32, i32) {
    %c0_i32 = arith.constant 0 : i32
    %c0_i32_0 = arith.constant 0 : i32
    return %arg0, %arg1, %c0_i32 : i32, i32, i32
  }
  func.func @transform_4(%arg0: i32, %arg1: i32) -> (i32, i32, i32) {
    %c0_i32 = arith.constant 0 : i32
    %c0_i32_0 = arith.constant 0 : i32
    %c0_i32_1 = arith.constant 0 : i32
    %c0_i32_2 = arith.constant 0 : i32
    return %c0_i32, %c0_i32_0, %c0_i32_1 : i32, i32, i32
  }
  func.func @transform_5(%arg0: i32, %arg1: i32) -> (i32, i32, i32) {
    %c0_i32 = arith.constant 0 : i32
    %c0_i32_0 = arith.constant 0 : i32
    %c0_i32_1 = arith.constant 0 : i32
    %c0_i32_2 = arith.constant 0 : i32
    return %c0_i32, %c0_i32_0, %c0_i32_1 : i32, i32, i32
  }
  func.func @transform_6(%arg0: i32, %arg1: i32) -> (i32, i32, i32) {
    %c0_i32 = arith.constant 0 : i32
    %c0_i32_0 = arith.constant 0 : i32
    %c0_i32_1 = arith.constant 0 : i32
    %c0_i32_2 = arith.constant 0 : i32
    return %c0_i32, %c0_i32_0, %c0_i32_1 : i32, i32, i32
  }
  func.func @transform_7(%arg0: i32, %arg1: i32) -> (i32, i32, i32) {
    %c0_i32 = arith.constant 0 : i32
    %c0_i32_0 = arith.constant 0 : i32
    %c0_i32_1 = arith.constant 0 : i32
    %c0_i32_2 = arith.constant 0 : i32
    return %c0_i32, %c0_i32_0, %c0_i32_1 : i32, i32, i32
  }
  func.func @transform_8(%arg0: i32, %arg1: i32) -> (i32, i32, i32) {
    %c0_i32 = arith.constant 0 : i32
    %c0_i32_0 = arith.constant 0 : i32
    return %arg0, %arg1, %c0_i32 : i32, i32, i32
  }
  func.func @transform_9(%arg0: i32, %arg1: i32) -> (i32, i32, i32, i32) {
    %c0_i32 = arith.constant 0 : i32
    %c0_i32_0 = arith.constant 0 : i32
    %c0_i32_1 = arith.constant 0 : i32
    return %arg0, %c0_i32, %arg1, %c0_i32_0 : i32, i32, i32, i32
  }
}

</mosaic_0001>

<bundles_post_ra>
// kernel: multi_head_attention.1
= control target key start
LH: loop header
LB: loop body
LE: loop exit
PB: predicated region body
PF: predicated region fallthrough
CT: control target
= control target key end

     0   :  { %s3545_s0 = inlined_call_operand.vmem [shape: f32[2,8,64], index: 0, kind: input, shape index: {}]   ;;  %s3546_s1 = inlined_call_operand.hbm [shape: f32[2,8,64], index: 1, kind: input, shape index: {}]   ;;  %s3547_s2 = inlined_call_operand.hbm [shape: f32[2,8,64], index: 2, kind: input, shape index: {}]   ;;  %s3548_s3 = inlined_call_operand.vmem [shape: s8[2,8,8], index: 3, kind: input, shape index: {}]   ;;  %s3549_s4 = inlined_call_operand.hbm [shape: bf16[3,64,64], index: 4, kind: input, shape index: {}]   ;;  %s3550_s5 = inlined_call_operand.hbm [shape: bf16[3,64,64], index: 5, kind: input, shape index: {}]   ;;  %s3551_s6 = inlined_call_operand.hbm [shape: bf16[3,64,128], index: 6, kind: input, shape index: {}]   ;;  %s3552_s7 = inlined_call_operand.hbm [shape: bf16[3,128,64], index: 7, kind: input, shape index: {}]   ;;  %s3553_s8 = inlined_call_operand.hbm [shape: f32[2,8,64], index: 8, kind: output, shape index: {0}]   ;;  %s3554_s9 = inlined_call_operand.hbm [shape: bf16[2,3,8,8], index: 9, kind: output, shape index: {1}]  }
   0x1   :  { %3558 = sst [smem:[#allocation27_spill]] %s3546_s1 }
   0x2   :  { %3559 = sst [smem:[#allocation28_spill]] %s3549_s4 }
   0x3   :  { %3560 = sst [smem:[#allocation29_spill]] %s3550_s5 }
   0x4   :  { %3561 = sst [smem:[#allocation30_spill]] %s3551_s6 }
   0x5   :  { %3562 = sst [smem:[#allocation31_spill]] %s3552_s7 }
   0x6   :  { %15 = vsyncpa [#allocation5], 0 }
   0x7   :  { %17 = vsyncpa [#allocation5 + $0x1], 0 }
   0x8   :  { %18 = vsyncpa [#allocation8], 0 }
   0x9   :  { %20 = vsyncpa [#allocation8 + $0x1], 0 }
   0xa   :  { %21 = vsyncpa [#allocation11], 0 }
   0xb   :  { %22 = vsyncpa [#allocation14], 0 }
   0xc   :  { %23 = vsyncpa [#allocation6], 0 }
   0xd   :  { %25 = vsyncpa [#allocation6 + $0x1], 0 }
   0xe   :  { %26 = vsyncpa [#allocation17], 0 }
   0xf   :  { %28 = vsyncpa [#allocation17 + $0x1], 0  ;;  %s3090_s30 = smov 0   ;;  %s3092_s10 = smov 0  }
  0x10   :  { %s3094_s11 = smov 0   ;;  %s3096_s12 = smov 0  }
  0x11   :  { %s3098_s13 = smov 0   ;;  %s3100_s14 = smov 0  }
  0x12 LB: > { %3563 = sst [smem:[#allocation25_spill]] %s3019_s13  ;;  %s3121_s15 = sadd.s32 4294967295, %s3023_s14   ;;  %s3023_s14 = sphi %s3100_s14, %s34_s14   ;;  %s3019_s13 = sphi %s3098_s13, %s3585_s13   ;;  %s3015_s12 = sphi %s3096_s12, %s3584_s12   ;;  %s3011_s11 = sphi %s3094_s11, %s3588_s11   ;;  %s3007_s10 = sphi %s3092_s10, %s3587_s10   ;;  %s3003_s30 = sphi %s3090_s30, %s3586_s30  }
  0x13   : > { %p2149_p0 = scmp.ge.s32.totalorder %s3023_s14, 1  ;;  %p3557_p1 = scmp.eq.s32.totalorder %s3121_s15, 0 }
  0x14   : > { %p299_p2 = scmp.lt.s32.totalorder %s3023_s14, 3  ;;  %s3025_s17 = smov [#allocation9]  }
  0x15   : > { %s311_s18 = sshll.u32 %s3025_s17, 4  ;;  %s3026_s20 = smov [#allocation10]   ;;  %s312_s18 = int_to_ptr.vmem [resolvable:$true] %s311_s18 }
  0x16   : > { %p3126_p3 = pnand %p2149_p0, %p299_p2  ;;  %s324_s21 = sshll.u32 %s3026_s20, 4  ;;  %s325_s21 = int_to_ptr.vmem [resolvable:$true] %s324_s21 }
  0x17   : > { %s3027_s22 = smov [#allocation12]   ;;  %s2748_s24 = scalar_lea.vmem %s312_s18, 1536 }
  0x18   : > { %p2565_p4 = pneg %p3126_p3  ;;  %s337_s23 = sshll.u32 %s3027_s22, 4  ;;  %s338_s23 = int_to_ptr.vmem [resolvable:$true] %s337_s23 }
  0x19   : > { %p2749_p8 = scmp.ne.s32.totalorder %s312_s18, %s2748_s24  ;;  %p2756_p11 = scmp.lt.s32.totalorder %s312_s18, %s312_s18 }
  0x1a   : > { %p3135_p6 = pnand %p2565_p4, %p3557_p1  ;;  %p2757_p12 = scmp.lt.s32.totalorder %s2748_s24, %s2748_s24 }
  0x1c   : > { %p2739_p7 = pneg %p3135_p6  ;;  %p2758_p13 = por %p2757_p12, %p2756_p11 }
  0x1e   : > { %p2751_p9 = pnand %p2749_p8, %p2739_p7 }
  0x20   : > { %p2752_p10 = pneg %p2751_p9 }
  0x22   : > { %p2759_p0 = pnand %p2758_p13, %p2752_p10 }
  0x24   : > { %2762 = shalt.err (!%p2759_p0)
}
  0x25   : > { %s3028_s25 = smov 64   ;;  %s3029_s26 = smov 4  }
  0x26   : > { %s3566_s4 = sld [smem:[#allocation28_spill]]  ;;  %s2774_s29 = scalar_lea.vmem %s325_s21, 1536 }
  0x27   : > { %p2775_p2 = scmp.ne.s32.totalorder %s325_s21, %s2774_s29  ;;  %p2782_p9 = scmp.lt.s32.totalorder %s325_s21, %s325_s21 }
  0x28   : > { %p2783_p10 = scmp.lt.s32.totalorder %s2774_s29, %s2774_s29 }
  0x29   : > { %p2777_p4 = pnand %p2775_p2, %p2739_p7 }
  0x2a   : > { %p2784_p11 = por %p2783_p10, %p2782_p9 }
  0x2b   : > { %p2778_p8 = pneg %p2777_p4 }
  0x2c   : > { %2568 = dma.hbm_to_vmem [thread:$0]  (!%p3135_p6), %s3566_s4, 1536, %s312_s18, [#allocation8], %s3028_s25, %s3028_s25, %s3029_s26  }
  0x2d   : > { %p2785_p12 = pnand %p2784_p11, %p2778_p8 }
  0x2f   : > { %2788 = shalt.err (!%p2785_p12)
}
  0x30   : > { %s3567_s5 = sld [smem:[#allocation29_spill]]  ;;  %s2800_s18 = scalar_lea.vmem %s338_s23, 1536 }
  0x31   : > { %p2801_p13 = scmp.ne.s32.totalorder %s338_s23, %s2800_s18  ;;  %p2808_p4 = scmp.lt.s32.totalorder %s338_s23, %s338_s23 }
  0x32   : > { %p2809_p8 = scmp.lt.s32.totalorder %s2800_s18, %s2800_s18 }
  0x33   : > { %p2803_p0 = pnand %p2801_p13, %p2739_p7 }
  0x34   : > { %p2810_p9 = por %p2809_p8, %p2808_p4 }
  0x35   : > { %p2804_p2 = pneg %p2803_p0 }
  0x36   : > { %2571 = dma.hbm_to_vmem [thread:$0]  (!%p3135_p6), %s3567_s5, 1536, %s325_s21, [#allocation11], %s3028_s25, %s3028_s25, %s3029_s26  }
  0x37   : > { %p2811_p10 = pnand %p2810_p9, %p2804_p2 }
  0x39   : > { %2814 = shalt.err (!%p2811_p10)
}
  0x3a   : > { %s3568_s6 = sld [smem:[#allocation30_spill]]  ;;  %s3030_s21 = smov [#allocation13]  }
  0x3b   : > { %s350_s27 = sshll.u32 %s3030_s21, 4  ;;  %s351_s27 = int_to_ptr.vmem [resolvable:$true] %s350_s27 }
  0x3c   : > { %s2826_s28 = scalar_lea.vmem %s351_s27, 3072  ;;  %p2834_p0 = scmp.lt.s32.totalorder %s351_s27, %s351_s27 }
  0x3d   : > { %p2827_p11 = scmp.ne.s32.totalorder %s351_s27, %s2826_s28  ;;  %p2835_p2 = scmp.lt.s32.totalorder %s2826_s28, %s2826_s28 }
  0x3f   : > { %p2829_p12 = pnand %p2827_p11, %p2739_p7  ;;  %p2836_p4 = por %p2835_p2, %p2834_p0 }
  0x40   : > { %2574 = dma.hbm_to_vmem [thread:$0]  (!%p3135_p6), %s3568_s6, 1536, %s338_s23, [#allocation11], %s3028_s25, %s3028_s25, %s3029_s26  }
  0x41   : > { %p2830_p13 = pneg %p2829_p12 }
  0x43   : > { %p2837_p8 = pnand %p2836_p4, %p2830_p13 }
  0x45   : > { %2840 = shalt.err (!%p2837_p8)
}
  0x46   : > { %s3569_s7 = sld [smem:[#allocation31_spill]]  ;;  %s2148_s19 = sadd.s32 4294967294, %s3023_s14  }
  0x47   : > { %s46_s17 = sadd.s32 1, %s3019_s13  ;;  %s81_s20 = sadd.s32 1, %s3011_s11 }
  0x48   : > { %p48_p7 = scmp.ge.s32.totalorder %s46_s17, 2  ;;  %p88_p9 = scmp.ne.s32.totalorder %s3011_s11, %s3007_s10 }
  0x49   : > { %p89_p10 = scmp.eq.s32.totalorder %s3023_s14, 0  ;;  %p94_p12 = scmp.ne.s32.totalorder %s3007_s10, %s3003_s30 }
  0x4a   : > { %s3590_s17 = smov (%p48_p7, %s46_s17), 0  ;;  %p264_p4 = scmp.eq.s32.totalorder %s2148_s19, 1 }
  0x4b   : > { %3570 = sst [smem:[#allocation26_spill]] %s3590_s17  ;;  %p3193_p11 = por %p89_p10, %p88_p9 }
  0x4c   : > { %2577 = dma.hbm_to_vmem [thread:$0]  (!%p3135_p6), %s3569_s7, 3072, %s351_s27, [#allocation14], %s3028_s25, %s3028_s25, %s3029_s26  }
  0x4d   : > { %s78_s25 = ssub.s32 %s3019_s13, %s3590_s17  ;;  %p258_p6 = scmp.eq.s32.totalorder %s3121_s15, 1 }
  0x4e   : > { %p79_p13 = scmp.eq.s32.totalorder %s78_s25, 0  ;;  %p3204_p0 = por %p3557_p1, %p94_p12 }
  0x4f   : > { %p3208_p2 = por %p258_p6, %p88_p9  ;;  %p3215_p8 = por %p264_p4, %p94_p12 }
  0x50   : > { %s3213_s24 = scalar_select %p79_p13, %s3011_s11, %s81_s20  }
  0x51   : > { %p2596_p7 = scmp.lt.s32.totalorder %s3023_s14, 2  ;;  %s374_s27 = sand.u32 1, %s3011_s11  }
  0x52   : > { %s2156_s28 = sshll.u32 %s3019_s13, 7  ;;  %s2155_s23 = sshll.u32 %s374_s27, 3 }
  0x53   : > { %s3575_s1 = sld [smem:[#allocation27_spill]]  ;;  %s378_s5 = scalar_lea.vmem [#allocation4], %s2155_s23 }
  0x54   : > { %s385_s6 = sshll.u32 %s378_s5, 4  ;;  %p3227_p9 = pnand %p2596_p7, %p3193_p11  ;;  %s386_s6 = int_to_ptr.vmem [resolvable:$true] %s385_s6 }
  0x55   : > { %s3234_s17 = scalar_lea.hbm %s3547_s2, %s2156_s28  ;;  %s375_s13 = scalar_lea.sflag [#allocation5], %s374_s27 }
  0x56   : > { %p2843_p10 = pneg %p3227_p9  ;;  %s2854_s29 = scalar_lea.vmem %s386_s6, 128 }
  0x57   : > { %p2855_p12 = scmp.ne.s32.totalorder %s386_s6, %s2854_s29  ;;  %s3031_s5 = smov [#allocation4]  }
  0x58   : > { %s2859_s18 = sshll.u32 %s3031_s5, 4  ;;  %s2860_s18 = int_to_ptr.vmem [resolvable:$false] %s2859_s18 }
  0x59   : > { %s383_s4 = scalar_lea.hbm %s3575_s1, %s2156_s28  ;;  %p2857_p6 = pnand %p2855_p12, %p2843_p10 }
  0x5a   : > { %s2861_s25 = scalar_lea.vmem %s2860_s18, 256  ;;  %p2862_p13 = scmp.lt.s32.totalorder %s386_s6, %s2860_s18 }
  0x5b   : > { %p2858_p11 = pneg %p2857_p6  ;;  %p2863_p4 = scmp.lt.s32.totalorder %s2861_s25, %s2854_s29 }
  0x5d   : > { %p2864_p7 = por %p2863_p4, %p2862_p13 }
  0x5f   : > { %p2865_p5 = pnand %p2864_p7, %p2858_p11 }
  0x61   : > { %2868 = shalt.err (!%p2865_p5)
}
  0x62   : > { %2581 = dma.hbm_to_vmem [thread:$0]  (!%p3227_p9), %s383_s4, 128, %s386_s6, %s375_s13  }
  0x63   : > { %s392_s27 = sand.u32 1, %s3023_s14   ;;  %s396_s28 = scalar_lea.vmem [#allocation7], %s2155_s23 }
  0x64   : > { %s403_s19 = sshll.u32 %s396_s28, 4  ;;  %s393_s20 = scalar_lea.sflag [#allocation8], %s392_s27  ;;  %s404_s19 = int_to_ptr.vmem [resolvable:$true] %s403_s19 }
  0x65   : > { %s2882_s1 = scalar_lea.vmem %s404_s19, 128  ;;  %s3032_s29 = smov [#allocation7]  }
  0x66   : > { %p2883_p12 = scmp.ne.s32.totalorder %s404_s19, %s2882_s1  ;;  %s2887_s5 = sshll.u32 %s3032_s29, 4  ;;  %s2888_s5 = int_to_ptr.vmem [resolvable:$false] %s2887_s5 }
  0x67   : > { %s2889_s18 = scalar_lea.vmem %s2888_s5, 256  ;;  %p2890_p5 = scmp.lt.s32.totalorder %s404_s19, %s2888_s5 }
  0x68   : > { %p2885_p6 = pnand %p2883_p12, %p2843_p10  ;;  %p2891_p11 = scmp.lt.s32.totalorder %s2889_s18, %s2882_s1 }
  0x6a   : > { %p2886_p1 = pneg %p2885_p6  ;;  %p2892_p13 = por %p2891_p11, %p2890_p5 }
  0x6c   : > { %p2893_p4 = pnand %p2892_p13, %p2886_p1 }
  0x6e   : > { %2896 = shalt.err (!%p2893_p4)
}
  0x6f   : > { %2584 = dma.hbm_to_vmem [thread:$0]  (!%p3227_p9), %s3234_s17, 128, %s404_s19, %s393_s20  }
  0x70   : > { %422 = sbr.rel (%p3126_p3) target bundleno = 2840 (0xb18), region = 52  ;;  %s3253_s4 = sand.u32 (!%p3126_p3), 1, %s3007_s10  }
  0x71   : > { %s3256_s6 = sshll.u32 (!%p3126_p3), %s3253_s4, 3  ;;  %s425_s1 = scalar_lea.sflag (!%p3126_p3), [#allocation5], %s3253_s4 }
  0x72   : > { %s428_s13 = scalar_lea.vmem (!%p3126_p3), [#allocation4], %s3256_s6 }
  0x75   : > { %2974 = dma.done.wait (%p3204_p0), %s425_s1, 128  }
  0x76   : > { %2976 = vsyncadd (%p3204_p0), %s425_s1, 4294967168  ;;  %s433_s7 = sand.u32 1, %s3121_s15   ;;  %s437_s17 = scalar_lea.vmem [#allocation7], %s3256_s6 }
  0x77   : > { %s434_s16 = scalar_lea.sflag [#allocation8], %s433_s7 }
  0x78   : > { %2978 = dma.done.wait (%p3204_p0), %s434_s16, 128  }
  0x79   : > { %2980 = vsyncadd (%p3204_p0), %s434_s16, 4294967168  ;;  %p3577_p1 = scmp.eq.s32.totalorder %s3121_s15, 0 }
  0x7b   : > { %2982 = dma.done.wait (%p3577_p1), [#allocation8], 1536   ;;  %p3578_p3 = pmov %p3577_p1 }
  0x7c   : > { %p3579_p9 = pmov %p3577_p1 }
  0x7d   : > { %2984 = vsyncadd (%p3578_p3), [#allocation8], 4294965760 }
  0x7e   : > { %2986 = dma.done.wait (%p3579_p9), [#allocation11], 3072   ;;  %p3580_p10 = pmov %p3577_p1 }
  0x7f   : > { %p3581_p7 = pmov %p3577_p1 }
  0x80   : > { %2988 = vsyncadd (%p3580_p10), [#allocation11], 4294964224 }
  0x81   : > { %2990 = dma.done.wait (%p3581_p7), [#allocation14], 3072   ;;  %p3582_p12 = pmov %p3577_p1 }
  0x82   : > { %v3033_v0 = vmov 0.0   ;;  %vm3034_vm0 = vmmov 0   ;;  %v2663_v1 = vld [vmem:[#allocation10 + $0x38] sm:$0xff]   ;;  %v2664_v2 = vld [vmem:[#allocation10 + $0x30] sm:$0xff]   ;;  %v2665_v5 = vld [vmem:[#allocation10 + $0x28] sm:$0xff]   ;;  %vm571_vm1 = vcmask 523264   ;;  %v535_v47 = vlaneseq }
  0x83   : > { %2992 = vsyncadd (%p3582_p12), [#allocation14], 4294964224  ;;  %2359 = vmatprep.subr.bf16.mxu0 %v3033_v0  ;;  %2335 = vmatprep.subr.bf16.mxu1 %v3033_v0  ;;  %v2666_v3 = vld [vmem:[#allocation10 + $0x18] sm:$0xff]   ;;  %v2668_v4 = vld [vmem:[#allocation10 + $0x10] sm:$0xff]   ;;  %p512_p0 = scmp.lt.s32.totalorder %s3015_s12, 1  ;;  %vm616_vm2 = vcmask 519168  }
  0x84   : > { %2367 = vmatprep.mubr.msk.bf16.mxu0 %vm3034_vm0, %v3033_v0  ;;  %2343 = vmatprep.mubr.msk.bf16.mxu1 %vm3034_vm0, %v3033_v0  ;;  %v2667_v6 = vld [vmem:[#allocation10 + $0x20] sm:$0xff]   ;;  %v2670_v7 = vld [vmem:[#allocation10 + $0x8] sm:$0xff]   ;;  %v2669_v11 = vld [vmem:[#allocation10 + $0x58] sm:$0xff]   ;;  %v536_v50 = vand.u32 127, %v535_v47  ;;  %vm1141_vm4 = vcmask 1043456   ;;  %vm1129_vm5 = vcmask 64512  }
  0x85   : > { %2360 = vmatpush3.bf16.msra.mxu0 %v2663_v1  ;;  %2336 = vmatpush3.bf16.msra.mxu1 %v2666_v3  ;;  %v531_v8 = vld [vmem:[%s428_s13] sm:$0xff]  ;;  %v2679_v12 = vld [vmem:[#allocation12 + $0x18] sm:$0xff]   ;;  %v2671_v13 = vld [vmem:[#allocation10 + $0x50] sm:$0xff]   ;;  %s3303_s15 = scalar_select %p512_p0, %s3015_s12, 1  ;;  %vm1193_vm6 = vcmask 60416  }
  0x86   : > { %2361 = vmatprep.subr.bf16.mxu0 %v3033_v0  ;;  %2337 = vmatprep.subr.bf16.mxu1 %v3033_v0  ;;  %v532_v9 = vpack.c.bf16 %v531_v8, %v531_v8  ;;  %v2672_v10 = vld [vmem:[#allocation10] sm:$0xff]   ;;  %v2680_v14 = vld [vmem:[#allocation12 + $0x10] sm:$0xff]   ;;  %v2673_v15 = vld [vmem:[#allocation10 + $0x48] sm:$0xff]   ;;  %vm537_vm3 = vcmp.eq.s32.totalorder %v536_v50, 64  ;;  %s2539_s5 = smul.u32 12, %s3253_s4  ;;  %s3036_s23 = smov [#allocation16]  }
  0x87   : > { %s2167_s26 = sshll.u32 %s3303_s15, 3  ;;  %v2681_v16 = vld [vmem:[#allocation12 + $0x8] sm:$0xff]   ;;  %v2674_v17 = vld [vmem:[#allocation10 + $0x40] sm:$0xff]   ;;  %v533_v19 = vld [vmem:[%s437_s17] sm:$0xff]  ;;  %v538_v55 = vsel %vm537_vm3, 1.0, %v3033_v0  ;;  %s2168_s28 = sshll.u32 %s3303_s15, 1 }
  0x88   : > { %v2682_v18 = vld [vmem:[#allocation12] sm:$0xff]   ;;  %v2675_v20 = vld [vmem:[#allocation9 + $0x18] sm:$0xff]   ;;  %v2676_v22 = vld [vmem:[#allocation9 + $0x10] sm:$0xff]   ;;  %v534_v23 = vpack.c.bf16 %v533_v19, %v533_v19  ;;  %s518_s27 = scalar_lea.vmem %s3545_s0, %s2167_s26  ;;  %s525_s29 = scalar_lea.vmem %s3548_s3, %s2168_s28 }
  0x89   : > { %2362 = vmatpush3.bf16.msra.mxu0 %v2664_v2  ;;  %2338 = vmatpush3.bf16.msra.mxu1 %v2668_v4  ;;  %v2683_v21 = vld [vmem:[#allocation12 + $0x38] sm:$0xff]   ;;  %v2684_v24 = vld [vmem:[#allocation12 + $0x30] sm:$0xff]   ;;  %v2677_v25 = vld [vmem:[#allocation9 + $0x8] sm:$0xff]   ;;  %s3427_s18 = scalar_lea.vmem [#allocation16], %s2539_s5  ;;  %s2540_s13 = smul.u32 192, %s3015_s12 }
  0x8a   : > { %2363 = vmatprep.subr.bf16.mxu0 %v3033_v0  ;;  %2339 = vmatprep.subr.bf16.mxu1 %v3033_v0  ;;  %v2685_v26 = vld [vmem:[#allocation12 + $0x28] sm:$0xff]   ;;  %v2678_v27 = vld [vmem:[#allocation9] sm:$0xff]   ;;  %v2687_v31 = vld [vmem:[#allocation12 + $0x58] sm:$0xff]   ;;  %s1940_s1 = sshll.u32 %s3427_s18, 4  ;;  %s1912_s15 = scalar_lea.sflag [#allocation17], %s3253_s4  ;;  %s3473_s1 = int_to_ptr.vmem [resolvable:$true] %s1940_s1 }
  0x8b   : > { %v3331_v28 = vld [vmem:[%s518_s27] sm:$0xff]  ;;  %v2686_v30 = vld [vmem:[#allocation12 + $0x20] sm:$0xff]   ;;  %v2688_v32 = vld [vmem:[#allocation12 + $0x50] sm:$0xff]   ;;  %s3478_s17 = scalar_lea.hbm %s3554_s9, %s2540_s13  ;;  %s2897_s26 = scalar_lea.vmem %s3473_s1, 192 }
  0x8c   : > { %v3337_v29 = vpack.c.bf16 %v3331_v28, %v3331_v28  ;;  %v2689_v33 = vld [vmem:[#allocation12 + $0x48] sm:$0xff]   ;;  %v2690_v34 = vld [vmem:[#allocation12 + $0x40] sm:$0xff]   ;;  %v2691_v35 = vld [vmem:[#allocation9 + $0x38] sm:$0xff]   ;;  %p2898_p6 = scmp.ne.s32.totalorder %s3473_s1, %s2897_s26  ;;  %s2901_s25 = sshll.u32 %s3036_s23, 4  ;;  %s2902_s25 = int_to_ptr.vmem [resolvable:$false] %s2901_s25 }
  0x8d   : > { %2364 = vmatpush3.bf16.msra.mxu0 %v2665_v5  ;;  %2340 = vmatpush3.bf16.msra.mxu1 %v2670_v7  ;;  %v2692_v36 = vld [vmem:[#allocation9 + $0x30] sm:$0xff]   ;;  %v2693_v37 = vld [vmem:[#allocation9 + $0x28] sm:$0xff]   ;;  %v2694_v38 = vld [vmem:[#allocation9 + $0x20] sm:$0xff]   ;;  %s2903_s27 = scalar_lea.vmem %s2902_s25, 384  ;;  %p2904_p13 = scmp.lt.s32.totalorder %s3473_s1, %s2902_s25 }
  0x8e   : > { %2365 = vmatprep.subr.bf16.mxu0 %v3033_v0  ;;  %2341 = vmatprep.subr.bf16.mxu1 %v3033_v0  ;;  %p2899_p5 = pnand %p2898_p6, %p3208_p2  ;;  %p2905_p4 = scmp.lt.s32.totalorder %s2903_s27, %s2897_s26 }
  0x90   : > { %p2900_p11 = pneg %p2899_p5  ;;  %p2906_p1 = por %p2905_p4, %p2904_p13 }
  0x91   : > { %2366 = vmatpush3.bf16.msra.mxu0 %v2667_v6  ;;  %2342 = vmatpush3.bf16.msra.mxu1 %v2672_v10 }
  0x92   : > { %2383 = vmatprep.subr.bf16.mxu0 %v3033_v0  ;;  %2347 = vmatprep.subr.bf16.mxu1 %v3033_v0  ;;  %p2907_p3 = pnand %p2906_p1, %p2900_p11 }
  0x94   : > { %2368 = vmatmul.mubr.msk.bf16.vlgmr.msra.gmra.mxu0 %vm571_vm1, %v532_v9  ;;  %2344 = vmatmul.mubr.msk.bf16.vlgmr.msra.gmra.mxu1 %vm571_vm1, %v532_v9 }
  0x95   : > { %2384 = vmatpush3.bf16.msra.mxu0 %v2669_v11  ;;  %2391 = vmatprep.mubr.msk.bf16.mxu0 %vm3034_vm0, %v3033_v0 }
  0x96   : > { %2385 = vmatprep.subr.bf16.mxu0 %v3033_v0  ;;  %2348 = vmatpush3.bf16.msra.mxu1 %v2679_v12 }
  0x97   : > { %2355 = vmatprep.mubr.msk.bf16.mxu1 %vm3034_vm0, %v3033_v0  ;;  %2349 = vmatprep.subr.bf16.mxu1 %v3033_v0 }
  0x99   : > { %2386 = vmatpush3.bf16.msra.mxu0 %v2671_v13 }
  0x9a   : > { %2387 = vmatprep.subr.bf16.mxu0 %v3033_v0  ;;  %2350 = vmatpush3.bf16.msra.mxu1 %v2680_v14 }
  0x9b   : > { %2351 = vmatprep.subr.bf16.mxu1 %v3033_v0 }
  0x9d   : > { %2388 = vmatpush3.bf16.msra.mxu0 %v2673_v15 }
  0x9e   : > { %2389 = vmatprep.subr.bf16.mxu0 %v3033_v0  ;;  %2352 = vmatpush3.bf16.msra.mxu1 %v2681_v16 }
  0x9f   : > { %2353 = vmatprep.subr.bf16.mxu1 %v3033_v0 }
  0xa1   : > { %2390 = vmatpush3.bf16.msra.mxu0 %v2674_v17 }
  0xa2   : > { %2407 = vmatprep.subr.bf16.mxu0 %v3033_v0  ;;  %2354 = vmatpush3.bf16.msra.mxu1 %v2682_v18 }
  0xa3   : > { %2371 = vmatprep.subr.bf16.mxu1 %v3033_v0 }
  0xa4   : > { %2392 = vmatmul.mubr.msk.bf16.vlgmr.msra.gmra.mxu0 %vm571_vm1, %v532_v9 }
  0xa5   : > { %2408 = vmatpush3.bf16.msra.mxu0 %v2675_v20  ;;  %2415 = vmatprep.mubr.msk.bf16.mxu0 %vm3034_vm0, %v3033_v0 }
  0xa6   : > { %2409 = vmatprep.subr.bf16.mxu0 %v3033_v0  ;;  %2356 = vmatmul.mubr.msk.bf16.vlgmr.msra.gmra.mxu1 %vm571_vm1, %v534_v23 }
  0xa7   : > { %2372 = vmatpush3.bf16.msra.mxu1 %v2683_v21  ;;  %2379 = vmatprep.mubr.msk.bf16.mxu1 %vm3034_vm0, %v3033_v0  ;;  %v1001_v21 = vld [vmem:[%s525_s29] sm:$0x3] }
  0xa8   : > { %2373 = vmatprep.subr.bf16.mxu1 %v3033_v0 }
  0xa9   : > { %2410 = vmatpush3.bf16.msra.mxu0 %v2676_v22  ;;  %v1002_v22 = vunpack.c.0.s8 %v1001_v21 }
  0xaa   : > { %2411 = vmatprep.subr.bf16.mxu0 %v3033_v0 }
  0xab   : > { %2374 = vmatpush3.bf16.msra.mxu1 %v2684_v24 }
  0xac   : > { %2375 = vmatprep.subr.bf16.mxu1 %v3033_v0 }
  0xad   : > { %2412 = vmatpush3.bf16.msra.mxu0 %v2677_v25 }
  0xae   : > { %2413 = vmatprep.subr.bf16.mxu0 %v3033_v0 }
  0xaf   : > { %2376 = vmatpush3.bf16.msra.mxu1 %v2685_v26 }
  0xb0   : > { %2377 = vmatprep.subr.bf16.mxu1 %v3033_v0 }
  0xb1   : > { %2414 = vmatpush3.bf16.msra.mxu0 %v2678_v27 }
  0xb2   : > { %2431 = vmatprep.subr.bf16.mxu0 %v3033_v0 }
  0xb3   : > { %2378 = vmatpush3.bf16.msra.mxu1 %v2686_v30 }
  0xb4   : > { %2416 = vmatmul.mubr.msk.bf16.vlgmr.msra.gmra.mxu0 %vm571_vm1, %v3337_v29  ;;  %2395 = vmatprep.subr.bf16.mxu1 %v3033_v0 }
  0xb5   : > { %2439 = vmatprep.mubr.msk.bf16.mxu0 %vm3034_vm0, %v3033_v0  ;;  %2432 = vmatpush3.bf16.msra.mxu0 %v2691_v35 }
  0xb6   : > { %2380 = vmatmul.mubr.msk.bf16.vlgmr.msra.gmra.mxu1 %vm571_vm1, %v534_v23  ;;  %2433 = vmatprep.subr.bf16.mxu0 %v3033_v0 }
  0xb7   : > { %2396 = vmatpush3.bf16.msra.mxu1 %v2687_v31  ;;  %2403 = vmatprep.mubr.msk.bf16.mxu1 %vm3034_vm0, %v3033_v0 }
  0xb8   : > { %2397 = vmatprep.subr.bf16.mxu1 %v3033_v0 }
  0xb9   : > { %2434 = vmatpush3.bf16.msra.mxu0 %v2692_v36 }
  0xba   : > { %2435 = vmatprep.subr.bf16.mxu0 %v3033_v0 }
  0xbb   : > { %2398 = vmatpush3.bf16.msra.mxu1 %v2688_v32 }
  0xbc   : > { %2399 = vmatprep.subr.bf16.mxu1 %v3033_v0 }
  0xbd   : > { %2436 = vmatpush3.bf16.msra.mxu0 %v2693_v37 }
  0xbe   : > { %2437 = vmatprep.subr.bf16.mxu0 %v3033_v0 }
  0xbf   : > { %2400 = vmatpush3.bf16.msra.mxu1 %v2689_v33 }
  0xc0   : > { %2401 = vmatprep.subr.bf16.mxu1 %v3033_v0 }
  0xc1   : > { %2438 = vmatpush3.bf16.msra.mxu0 %v2694_v38 }
  0xc2   : > { %2455 = vmatprep.subr.bf16.mxu0 %v3033_v0 }
  0xc3   : > { %2402 = vmatpush3.bf16.msra.mxu1 %v2690_v34 }
  0xc4   : > { %2419 = vmatprep.subr.bf16.mxu1 %v3033_v0  ;;  %2440 = vmatmul.mubr.msk.bf16.vlgmr.msra.gmra.mxu0 %vm571_vm1, %v3337_v29 }
  0xc5   : > { %2471 = vmatprep.mubr.msk.bf16.mxu0 %vm3034_vm0, %v3033_v0 }
  0xc6   : > { %2404 = vmatmul.mubr.msk.bf16.vlgmr.msra.gmra.mxu1 %vm571_vm1, %v534_v23  ;;  %v1003_v23 = vcvt.s32.f32 %v1002_v22 }
  0xc7   : > { %2421 = vmatprep.mubr.msk.bf16.mxu1 %vm3034_vm0, %v3033_v0 }
  0xc8   : > { %v3379_v24 = vmul.f32 -1e+09, %v1003_v23 }
 0x154   : > { %v762_v39 = vpop.f32.mrf.mxu0  ;;  %v609_v42 = vpop.f32.mrf.mxu1 }
 0x155   : > { %v768_v40 = vpack.c.bf16 %v762_v39, %v762_v39  ;;  %v615_v44 = vpack.c.bf16 %v609_v42, %v609_v42 }
 0x156   : > { %v2369_v41 = vpop.f32.mrf.mxu0  ;;  %v2345_v45 = vpop.f32.mrf.mxu1 }
 0x157   : > { %770 = vst.msk [vmem:[#allocation2 + $0x4] sm:$0xf] %vm616_vm2, %v768_v40  ;;  %617 = vst.msk [vmem:[#allocation2] sm:$0xf] %vm616_vm2, %v615_v44 }
 0x158   : > { %v765_v43 = vpop.f32.mrf.mxu0  ;;  %v612_v48 = vpop.f32.mrf.mxu1 }
 0x15a   : > { %v2370_v46 = vpop.f32.mrf.mxu0  ;;  %v2346_v49 = vpop.f32.mrf.mxu1 }
 0x15e   : > { %v1082_v51 = vld [vmem:[#allocation2] sm:$0xf]  ;;  %v1288_v41 = vld [vmem:[#allocation2 + $0x4] sm:$0xf] }
 0x15f   : > { %v1087_v52 = vsel %vm571_vm1, %v1082_v51, 0  ;;  %v1293_v43 = vsel %vm571_vm1, %v1288_v41, 0 }
 0x160   : > { %2420 = vmatpush3.bf16.xpose.msra.mxu1 %v1087_v52 }
 0x161   : > { %2425 = vmatprep.subr.bf16.mxu1 %v3033_v0 }
 0x164   : > { %v914_v53 = vpop.f32.mrf.mxu0 }
 0x165   : > { %v920_v54 = vpack.c.bf16 %v914_v53, %v914_v53 }
 0x166   : > { %v2393_v56 = vpop.f32.mrf.mxu0  ;;  %v687_v57 = vpop.f32.mrf.mxu1 }
 0x167   : > { %922 = vst.msk [vmem:[#allocation2 + $0x8] sm:$0xf] %vm616_vm2, %v920_v54  ;;  %v688_v59 = vadd.f32 %v687_v57, %v538_v55 }
 0x168   : > { %v917_v58 = vpop.f32.mrf.mxu0  ;;  %v2357_v60 = vpop.f32.mrf.mxu1 }
 0x169   : > { %v693_v62 = vpack.c.bf16 %v688_v59, %v688_v59 }
 0x16a   : > { %v2394_v61 = vpop.f32.mrf.mxu0  ;;  %v690_v63 = vpop.f32.mrf.mxu1 }
 0x16b   : > { %694 = vst [vmem:[#allocation3] sm:$0xf] %v693_v62  ;;  %v3035_v62 = vmov 64   ;;  %v2695_v63 = vld [vmem:[#allocation13 + $0x78] sm:$0xff]  }
 0x16c   : > { %v2358_v1 = vpop.f32.mrf.mxu1  ;;  %2661 = vset.pattern.permute.xlu1 %v3035_v62  ;;  %2662 = vset.pattern.permute.xlu0 %v3035_v62 }
 0x16d   : > { %v2697_v1 = vld [vmem:[#allocation13 + $0x38] sm:$0xff]   ;;  %2456 = vmatpush3.bf16.msra.mxu0 %v2695_v63 }
 0x16e   : > { %2457 = vmatprep.subr.bf16.mxu0 %v3033_v0 }
 0x172   : > { %v1137_v2 = vld [vmem:[#allocation3] sm:$0xf] }
 0x173   : > { %v1143_v5 = vsel %vm1141_vm4, %v1137_v2, 0  ;;  %v2696_v2 = vld [vmem:[#allocation13 + $0x70] sm:$0xff]  }
 0x174   : > { %v1075_v3 = vpop.f32.mrf.mxu0  ;;  %2458 = vmatpush3.bf16.msra.mxu0 %v2696_v2 }
 0x175   : > { %v1081_v4 = vpack.c.bf16 %v1075_v3, %v1075_v3  ;;  %v2699_v3 = vld [vmem:[#allocation13 + $0x30] sm:$0xff]   ;;  %2459 = vmatprep.subr.bf16.mxu0 %v3033_v0 }
 0x176   : > { %v2417_v6 = vpop.f32.mrf.mxu0  ;;  %v838_v9 = vpop.f32.mrf.mxu1 }
 0x177   : > { %2422 = vmatmul.mubr.msk.bf16.vlgmr.msra.gmra.mxu1 %vm571_vm1, %v1081_v4  ;;  %v839_v10 = vadd.f32 %v838_v9, %v538_v55  ;;  %v2698_v4 = vld [vmem:[#allocation13 + $0x68] sm:$0xff]   ;;  %v2700_v6 = vld [vmem:[#allocation13 + $0x60] sm:$0xff]   ;;  %v2705_v9 = vld [vmem:[#allocation13 + $0x18] sm:$0xff]  }
 0x178   : > { %v1078_v7 = vpop.f32.mrf.mxu0  ;;  %2426 = vmatpush3.bf16.msra.mxu1 %v1143_v5  ;;  %2427 = vmatprep.mubr.msk.bf16.mxu1 %vm3034_vm0, %v3033_v0  ;;  %v2381_v11 = vpop.f32.mrf.mxu1  ;;  %v2701_v5 = vld [vmem:[#allocation13 + $0x28] sm:$0xff]  }
 0x179   : > { %2443 = vmatprep.subr.bf16.mxu1 %v3033_v0  ;;  %v844_v12 = vpack.c.bf16 %v839_v10, %v839_v10  ;;  %2460 = vmatpush3.bf16.msra.mxu0 %v2698_v4  ;;  %v2703_v7 = vld [vmem:[#allocation13 + $0x20] sm:$0xff]   ;;  %v2704_v10 = vld [vmem:[#allocation13 + $0x50] sm:$0xff]   ;;  %v2715_v4 = vld [vmem:[#allocation13 + $0xb8] sm:$0xff]  }
 0x17a   : > { %v2418_v8 = vpop.f32.mrf.mxu0  ;;  %v841_v13 = vpop.f32.mrf.mxu1  ;;  %2461 = vmatprep.subr.bf16.mxu0 %v3033_v0  ;;  %v2707_v11 = vld [vmem:[#allocation13 + $0x10] sm:$0xff]  }
 0x17b   : > { %846 = vst [vmem:[#allocation3 + $0x4] sm:$0xf] %v844_v12  ;;  %v2702_v8 = vld [vmem:[#allocation13 + $0x58] sm:$0xff]   ;;  %v2706_v12 = vld [vmem:[#allocation13 + $0x48] sm:$0xff]  }
 0x17c   : > { %v2382_v14 = vpop.f32.mrf.mxu1 }
 0x17d   : > { %2462 = vmatpush3.bf16.msra.mxu0 %v2700_v6  ;;  %v2718_v6 = vld [vmem:[#allocation13 + $0xa0] sm:$0xff]  }
 0x17e   : > { %2463 = vmatprep.subr.bf16.mxu0 %v3033_v0 }
 0x181   : > { %2464 = vmatpush3.bf16.msra.mxu0 %v2702_v8  ;;  %v2720_v8 = vld [vmem:[#allocation13 + $0x90] sm:$0xff]  }
 0x182   : > { %v1343_v45 = vld [vmem:[#allocation3 + $0x4] sm:$0xf]  ;;  %2465 = vmatprep.subr.bf16.mxu0 %v3033_v0 }
 0x183   : > { %v1348_v46 = vsel %vm1141_vm4, %v1343_v45, 0 }
 0x184   : > { %v1280_v33 = vpop.f32.mrf.mxu0 }
 0x185   : > { %v1286_v44 = vpack.c.bf16 %v1280_v33, %v1280_v33  ;;  %2466 = vmatpush3.bf16.msra.mxu0 %v2704_v10 }
 0x186   : > { %v990_v15 = vpop.f32.mrf.mxu1  ;;  %v2441_v34 = vpop.f32.mrf.mxu0  ;;  %2467 = vmatprep.subr.bf16.mxu0 %v3033_v0 }
 0x187   : > { %v991_v16 = vadd.f32 %v990_v15, %v538_v55  ;;  %v2712_v34 = vld [vmem:[#allocation9 + $0x50] sm:$0xff]  }
 0x188   : > { %v2405_v17 = vpop.f32.mrf.mxu1  ;;  %v1283_v35 = vpop.f32.mrf.mxu0 }
 0x189   : > { %v996_v18 = vpack.c.bf16 %v991_v16, %v991_v16  ;;  %2468 = vmatpush3.bf16.msra.mxu0 %v2706_v12  ;;  %v2708_v17 = vld [vmem:[#allocation13 + $0x40] sm:$0xff]   ;;  %v1670_v35 = vld [vmem:[#allocation2 + $0x8] sm:$0xf] }
 0x18a   : > { %v993_v19 = vpop.f32.mrf.mxu1  ;;  %v2442_v36 = vpop.f32.mrf.mxu0  ;;  %2469 = vmatprep.subr.bf16.mxu0 %v3033_v0 }
 0x18b   : > { %998 = vst [vmem:[#allocation3 + $0x8] sm:$0xf] %v996_v18  ;;  %v2709_v18 = vld [vmem:[#allocation13 + $0x8] sm:$0xff]  }
 0x18c   : > { %v2406_v20 = vpop.f32.mrf.mxu1 }
 0x18d   : > { %2470 = vmatpush3.bf16.msra.mxu0 %v2708_v17  ;;  %v2710_v20 = vld [vmem:[#allocation13] sm:$0xff]  }
 0x18e   : > { %2495 = vmatprep.subr.bf16.mxu0 %v3033_v0 }
 0x237   : > { %v1123_v25 = vpop.f32.mrf.mxu1 }
 0x238   : > { %v1124_v26 = vadd.f32 %v1123_v25, %v3379_v24 }
 0x239   : > { %v2423_v27 = vpop.f32.mrf.mxu1 }
 0x23a   : > { %v1130_v30 = vsel %vm1129_vm5, %v1124_v26, -inf }
 0x23b   : > { %1131 = vmax.xlane.f32.xlu0 %v1130_v30  ;;  %v1126_v31 = vpop.f32.mrf.mxu1 }
 0x23d   : > { %v2424_v32 = vpop.f32.mrf.mxu1 }
 0x2c4   : > { %v1132_v37 = vpop.xlane.xlu0 %1131 }
 0x2c5   : > { %v1133_v38 = vsub.f32 %v1124_v26, %v1132_v37  ;;  %v2711_v26 = vld [vmem:[#allocation9 + $0x58] sm:$0xff]  }
 0x2c7   : > { %v1134_v39 = vmul.f32 1.442695, %v1133_v38  ;;  %v1675_v38 = vsel %vm571_vm1, %v1670_v35, 0 }
 0x2c9   : > { %2723 = vpow2.f32 %v1134_v39  ;;  %v2713_v39 = vld [vmem:[#allocation9 + $0x48] sm:$0xff]  }
 0x2d6   : > { %v3383_v40 = vpop.eup %2723 }
 0x2d7   : > { %v1136_v42 = vpack.c.bf16 %v3383_v40, %v3383_v40 }
 0x2d9   : > { %2428 = vmatmul.mubr.msk.bf16.vlgmr.msra.gmra.mxu1 %vm1129_vm5, %v1136_v42 }
 0x2da   : > { %2444 = vmatpush3.bf16.xpose.msra.mxu1 %v1293_v43  ;;  %2445 = vmatprep.mubr.msk.bf16.mxu1 %vm3034_vm0, %v3033_v0 }
 0x2db   : > { %2449 = vmatprep.subr.bf16.mxu1 %v3033_v0 }
 0x2e1   : > { %2446 = vmatmul.mubr.msk.bf16.vlgmr.msra.gmra.mxu1 %vm571_vm1, %v1286_v44 }
 0x2e2   : > { %2450 = vmatpush3.bf16.msra.mxu1 %v1348_v46  ;;  %2451 = vmatprep.mubr.msk.bf16.mxu1 %vm3034_vm0, %v3033_v0 }
 0x2e3   : > { %2475 = vmatprep.subr.bf16.mxu1 %v3033_v0 }
 0x399   : > { %v3397_v47 = vpop.f32.mrf.mxu1 }
 0x39b   : > { %v2429_v48 = vpop.f32.mrf.mxu1 }
 0x39d   : > { %v1182_v49 = vpop.f32.mrf.mxu1 }
 0x39f   : > { %v2430_v50 = vpop.f32.mrf.mxu1 }
 0x3a1   : > { %v1329_v51 = vpop.f32.mrf.mxu1 }
 0x3a2   : > { %v1330_v52 = vadd.f32 %v1329_v51, %v3379_v24  ;;  %v1725_v51 = vld [vmem:[#allocation3 + $0x8] sm:$0xf] }
 0x3a3   : > { %v2447_v53 = vpop.f32.mrf.mxu1 }
 0x3a4   : > { %v1335_v54 = vsel %vm1129_vm5, %v1330_v52, -inf }
 0x3a5   : > { %1336 = vmax.xlane.f32.xlu0 %v1335_v54  ;;  %v1332_v55 = vpop.f32.mrf.mxu1 }
 0x3a7   : > { %v2448_v56 = vpop.f32.mrf.mxu1 }
 0x42e   : > { %v1337_v57 = vpop.xlane.xlu0 %1336 }
 0x42f   : > { %v1338_v58 = vsub.f32 %v1330_v52, %v1337_v57 }
 0x431   : > { %v1339_v59 = vmul.f32 1.442695, %v1338_v58 }
 0x433   : > { %2725 = vpow2.f32 %v1339_v59 }
 0x440   : > { %v3401_v60 = vpop.eup %2725 }
 0x441   : > { %v1341_v61 = vpack.c.bf16 %v3401_v60, %v3401_v60 }
 0x443   : > { %2452 = vmatmul.mubr.msk.bf16.vlgmr.msra.gmra.mxu1 %vm1129_vm5, %v1341_v61 }
 0x444   : > { %2491 = vmatprep.mubr.msk.bf16.mxu1 %vm3034_vm0, %v3033_v0  ;;  %2476 = vmatpush3.bf16.msra.mxu1 %v2697_v1 }
 0x445   : > { %2477 = vmatprep.subr.bf16.mxu1 %v3033_v0 }
 0x448   : > { %2478 = vmatpush3.bf16.msra.mxu1 %v2699_v3 }
 0x449   : > { %2479 = vmatprep.subr.bf16.mxu1 %v3033_v0 }
 0x44c   : > { %2480 = vmatpush3.bf16.msra.mxu1 %v2701_v5  ;;  %v2716_v5 = vld [vmem:[#allocation13 + $0xb0] sm:$0xff]  }
 0x44d   : > { %2481 = vmatprep.subr.bf16.mxu1 %v3033_v0 }
 0x450   : > { %2482 = vmatpush3.bf16.msra.mxu1 %v2703_v7  ;;  %v2719_v7 = vld [vmem:[#allocation13 + $0x98] sm:$0xff]  }
 0x451   : > { %2483 = vmatprep.subr.bf16.mxu1 %v3033_v0 }
 0x454   : > { %2484 = vmatpush3.bf16.msra.mxu1 %v2705_v9  ;;  %v2721_v9 = vld [vmem:[#allocation13 + $0x88] sm:$0xff]  }
 0x455   : > { %2485 = vmatprep.subr.bf16.mxu1 %v3033_v0 }
 0x458   : > { %2486 = vmatpush3.bf16.msra.mxu1 %v2707_v11 }
 0x459   : > { %2487 = vmatprep.subr.bf16.mxu1 %v3033_v0 }
 0x45c   : > { %2488 = vmatpush3.bf16.msra.mxu1 %v2709_v18 }
 0x45d   : > { %2489 = vmatprep.subr.bf16.mxu1 %v3033_v0 }
 0x460   : > { %2490 = vmatpush3.bf16.msra.mxu1 %v2710_v20 }
 0x461   : > { %2507 = vmatprep.subr.bf16.mxu1 %v3033_v0 }
 0x503   : > { %v1384_v13 = vpop.f32.mrf.mxu1 }
 0x504   : > { %2727 = vrcp.f32 %v1384_v13 }
 0x505   : > { %v2453_v14 = vpop.f32.mrf.mxu1  ;;  %2729 = vrcp.f32 %v3397_v47 }
 0x506   : > { %v2722_v14 = vld [vmem:[#allocation13 + $0x80] sm:$0xff]  }
 0x507   : > { %v1387_v15 = vpop.f32.mrf.mxu1 }
 0x509   : > { %v2454_v16 = vpop.f32.mrf.mxu1 }
 0x511   : > { %v2728_v19 = vpop.eup %2727 }
 0x512   : > { %1393 = vperm.xlu1 %2661, %v2728_v19   ;;  %v2730_v21 = vpop.eup %2729 }
 0x516   : > { %1188 = vperm.xlu1 %2661, %v2730_v21  }
 0x58d   : > { %v1394_v22 = vpop.permute.xlu1 %1393 }
 0x58e   : > { %v1396_v23 = vmul.f32 %v3401_v60, %v1394_v22  ;;  %v1400_v25 = vmul.f32 %v1394_v22, %v1384_v13 }
 0x590   : > { %v1397_v27 = vpack.c.bf16 %v1396_v23, %v1396_v23  ;;  %v1401_v30 = vpack.c.bf16 %v1400_v25, %v1400_v25 }
 0x591   : > { %v1189_v31 = vpop.permute.xlu1 %1188 }
 0x592   : > { %2213 = vst.msk [vmem:[%s3427_s18 + $0x4] sm:$0xf] %vm1193_vm6, %v1397_v27  ;;  %v1191_v32 = vmul.f32 %v3383_v40, %v1189_v31  ;;  %v1195_v33 = vmul.f32 %v1189_v31, %v3397_v47  ;;  %2472 = vmatmul.mubr.bf16.vlgmr.msra.gmra.mxu0 %v1401_v30  ;;  %v2714_v40 = vld [vmem:[#allocation9 + $0x40] sm:$0xff]  }
 0x593   : > { %2496 = vmatpush3.bf16.msra.mxu0 %v2711_v26  ;;  %2503 = vmatprep.mubr.msk.bf16.mxu0 %vm3034_vm0, %v3033_v0 }
 0x594   : > { %v1192_v36 = vpack.c.bf16 %v1191_v32, %v1191_v32  ;;  %v1196_v37 = vpack.c.bf16 %v1195_v33, %v1195_v33  ;;  %2497 = vmatprep.subr.bf16.mxu0 %v3033_v0 }
 0x596   : > { %1194 = vst.msk [vmem:[%s3427_s18] sm:$0xf] %vm1193_vm6, %v1192_v36  ;;  %2492 = vmatmul.mubr.bf16.vlgmr.msra.gmra.mxu1 %v1196_v37 }
 0x597   : > { %2498 = vmatpush3.bf16.msra.mxu0 %v2712_v34  ;;  %2508 = vmatpush3.bf16.xpose.msra.mxu1 %v1675_v38 }
 0x598   : > { %2499 = vmatprep.subr.bf16.mxu0 %v3033_v0  ;;  %2509 = vmatprep.mubr.msk.bf16.mxu1 %vm3034_vm0, %v3033_v0 }
 0x599   : > { %2513 = vmatprep.subr.bf16.mxu1 %v3033_v0 }
 0x59b   : > { %2500 = vmatpush3.bf16.msra.mxu0 %v2713_v39 }
 0x59c   : > { %2501 = vmatprep.subr.bf16.mxu0 %v3033_v0 }
 0x59f   : > { %2502 = vmatpush3.bf16.msra.mxu0 %v2714_v40 }
 0x5a0   : > { %2519 = vmatprep.subr.bf16.mxu0 %v3033_v0 }
 0x5a2   : > { %2504 = vmatmul.mubr.msk.bf16.vlgmr.msra.gmra.mxu0 %vm571_vm1, %v3337_v29  ;;  %v1730_v29 = vsel %vm1141_vm4, %v1725_v51, 0 }
 0x5a3   : > { %2535 = vmatprep.mubr.msk.bf16.mxu0 %vm3034_vm0, %v3033_v0  ;;  %2520 = vmatpush3.bf16.msra.mxu0 %v2715_v4 }
 0x5a4   : > { %2521 = vmatprep.subr.bf16.mxu0 %v3033_v0 }
 0x5a7   : > { %2522 = vmatpush3.bf16.msra.mxu0 %v2716_v5 }
 0x5a8   : > { %2523 = vmatprep.subr.bf16.mxu0 %v3033_v0 }
 0x652   : > { %v1501_v41 = vpop.f32.mrf.mxu0 }
 0x654   : > { %v2473_v42 = vpop.f32.mrf.mxu0 }
 0x656   : > { %v1504_v43 = vpop.f32.mrf.mxu0  ;;  %v1589_v44 = vpop.f32.mrf.mxu1 }
 0x657   : > { %v3449_v45 = vadd.f32 %v1589_v44, %v1501_v41 }
 0x658   : > { %v2474_v46 = vpop.f32.mrf.mxu0  ;;  %v2493_v47 = vpop.f32.mrf.mxu1 }
 0x65a   : > { %v1592_v48 = vpop.f32.mrf.mxu1 }
 0x65c   : > { %v2494_v49 = vpop.f32.mrf.mxu1 }
 0x662   : > { %v1662_v50 = vpop.f32.mrf.mxu0 }
 0x663   : > { %v1668_v52 = vpack.c.bf16 %v1662_v50, %v1662_v50 }
 0x664   : > { %v2505_v53 = vpop.f32.mrf.mxu0 }
 0x665   : > { %2510 = vmatmul.mubr.msk.bf16.vlgmr.msra.gmra.mxu1 %vm571_vm1, %v1668_v52 }
 0x666   : > { %2514 = vmatpush3.bf16.msra.mxu1 %v1730_v29  ;;  %v1665_v54 = vpop.f32.mrf.mxu0  ;;  %2515 = vmatprep.mubr.msk.bf16.mxu1 %vm3034_vm0, %v3033_v0 }
 0x668   : > { %v2506_v55 = vpop.f32.mrf.mxu0 }
 0x725   : > { %v1711_v56 = vpop.f32.mrf.mxu1 }
 0x726   : > { %v1712_v57 = vadd.f32 %v1711_v56, %v3379_v24  ;;  %v2717_v24 = vld [vmem:[#allocation13 + $0xa8] sm:$0xff]  }
 0x727   : > { %v2511_v58 = vpop.f32.mrf.mxu1  ;;  %2524 = vmatpush3.bf16.msra.mxu0 %v2717_v24 }
 0x728   : > { %v1717_v59 = vsel %vm1129_vm5, %v1712_v57, -inf  ;;  %2525 = vmatprep.subr.bf16.mxu0 %v3033_v0 }
 0x729   : > { %1718 = vmax.xlane.f32.xlu0 %v1717_v59  ;;  %v1714_v60 = vpop.f32.mrf.mxu1 }
 0x72b   : > { %v2512_v61 = vpop.f32.mrf.mxu1  ;;  %2526 = vmatpush3.bf16.msra.mxu0 %v2718_v6 }
 0x72c   : > { %2527 = vmatprep.subr.bf16.mxu0 %v3033_v0 }
 0x72f   : > { %2528 = vmatpush3.bf16.msra.mxu0 %v2719_v7 }
 0x730   : > { %2529 = vmatprep.subr.bf16.mxu0 %v3033_v0 }
 0x733   : > { %2530 = vmatpush3.bf16.msra.mxu0 %v2720_v8 }
 0x734   : > { %2531 = vmatprep.subr.bf16.mxu0 %v3033_v0 }
 0x737   : > { %2532 = vmatpush3.bf16.msra.mxu0 %v2721_v9 }
 0x738   : > { %2533 = vmatprep.subr.bf16.mxu0 %v3033_v0 }
 0x73b   : > { %2534 = vmatpush3.bf16.msra.mxu0 %v2722_v14 }
 0x7b2   : > { %v1719_v62 = vpop.xlane.xlu0 %1718 }
 0x7b3   : > { %v1720_v63 = vsub.f32 %v1712_v57, %v1719_v62 }
 0x7b5   : > { %v1721_v1 = vmul.f32 1.442695, %v1720_v63 }
 0x7b7   : > { %2731 = vpow2.f32 %v1721_v1 }
 0x7c4   : > { %v2732_v2 = vpop.eup %2731 }
 0x7c5   : > { %v1723_v3 = vpack.c.bf16 %v2732_v2, %v2732_v2 }
 0x7c7   : > { %2516 = vmatmul.mubr.msk.bf16.vlgmr.msra.gmra.mxu1 %vm1129_vm5, %v1723_v3 }
 0x887   : > { %v1766_v10 = vpop.f32.mrf.mxu1 }
 0x888   : > { %2733 = vrcp.f32 %v1766_v10 }
 0x889   : > { %v2517_v11 = vpop.f32.mrf.mxu1 }
 0x88b   : > { %v1769_v12 = vpop.f32.mrf.mxu1 }
 0x88d   : > { %v2518_v13 = vpop.f32.mrf.mxu1 }
 0x895   : > { %v2734_v15 = vpop.eup %2733 }
 0x896   : > { %1775 = vperm.xlu1 %2661, %v2734_v15  }
 0x911   : > { %v1776_v16 = vpop.permute.xlu1 %1775 }
 0x912   : > { %v1778_v17 = vmul.f32 %v2732_v2, %v1776_v16  ;;  %v1782_v18 = vmul.f32 %v1776_v16, %v1766_v10 }
 0x914   : > { %v1779_v19 = vpack.c.bf16 %v1778_v17, %v1778_v17  ;;  %v1783_v20 = vpack.c.bf16 %v1782_v18, %v1782_v18 }
 0x916   : > { %2237 = vst.msk [vmem:[%s3427_s18 + $0x8] sm:$0xf] %vm1193_vm6, %v1779_v19  ;;  %2536 = vmatmul.mubr.bf16.vlgmr.msra.gmra.mxu0 %v1783_v20 }
 0x9d6   : > { %v1883_v0 = vpop.f32.mrf.mxu0 }
 0x9d7   : > { %v1889_v21 = vadd.f32 %v1883_v0, %v3449_v45 }
 0x9d8   : > { %v2537_v22 = vpop.f32.mrf.mxu0 }
 0x9d9   : > { %v1890_v23 = vadd.f32 %v1889_v21, %v3331_v28 }
 0x9da   : > { %v1886_v25 = vpop.f32.mrf.mxu0 }
 0x9db   : > { %v1891_v26 = vsel %vm571_vm1, %v1890_v23, 0.0 }
 0x9dc   : > { %1892 = vadd.xlane.f32.xlu0 %v1891_v26  ;;  %v2538_v27 = vpop.f32.mrf.mxu0 }
 0xa65   : > { %v1893_v30 = vpop.xlane.xlu0 %1892 }
 0xa66   : > { %v1895_v31 = vmul.f32 0.015625, %v1893_v30 }
 0xa68   : > { %v1896_v32 = vsub.f32 %v1890_v23, %v1895_v31 }
 0xa6a   : > { %v1897_v33 = vmul.f32 %v1896_v32, %v1896_v32 }
 0xa6c   : > { %v1898_v34 = vsel %vm571_vm1, %v1897_v33, 0.0 }
 0xa6d   : > { %1899 = vadd.xlane.f32.xlu1 %v1898_v34 }
 0xa6e   : > { %2910 = shalt.err (!%p2907_p3)
}
 0xa6f   : > { %s2911_s28 = scalar_lea.hbm %s3478_s17, 192  ;;  %s2915_s29 = scalar_lea.hbm %s3554_s9, 384 }
 0xa70   : > { %p2912_p9 = scmp.ne.s32.totalorder %s3478_s17, %s2911_s28  ;;  %p2916_p12 = scmp.lt.s32.totalorder %s3478_s17, %s3554_s9 }
 0xa71   : > { %p2917_p0 = scmp.lt.s32.totalorder %s2915_s29, %s2911_s28 }
 0xa72   : > { %p2913_p10 = pnand %p2912_p9, %p3208_p2 }
 0xa73   : > { %p2918_p6 = por %p2917_p0, %p2916_p12 }
 0xa74   : > { %p2914_p7 = pneg %p2913_p10 }
 0xa76   : > { %p2919_p5 = pnand %p2918_p6, %p2914_p7 }
 0xa78   : > { %2922 = shalt.err (!%p2919_p5)
}
 0xa79   : > { %s3037_s13 = smov 64   ;;  %s3038_s7 = smov 4  }
 0xa7a   : > { %2562 = dma.vmem_to_hbm [thread:$0]  (%p3208_p2), %s3473_s1, 192, %s3478_s17, %s1912_s15, %s3037_s13, %s3037_s13, %s3038_s7  }
 0xa7b   : > { %s2247_s16 = sshll.u32 %s3015_s12, 7  ;;  %s504_s26 = scalar_lea.vmem [#allocation15], %s3256_s6 }
 0xa7c   : > { %s1926_s23 = sshll.u32 %s504_s26, 4  ;;  %s1924_s28 = scalar_lea.hbm %s3553_s8, %s2247_s16  ;;  %s1927_s23 = int_to_ptr.vmem [resolvable:$true] %s1926_s23 }
 0xa7d   : > { %s1907_s19 = scalar_lea.sflag [#allocation6], %s3253_s4  ;;  %s2923_s20 = scalar_lea.vmem %s1927_s23, 128 }
 0xa7e   : > { %p2924_p11 = scmp.ne.s32.totalorder %s1927_s23, %s2923_s20  ;;  %s3039_s1 = smov [#allocation15]  }
 0xa7f   : > { %s2927_s17 = sshll.u32 %s3039_s1, 4  ;;  %s2928_s17 = int_to_ptr.vmem [resolvable:$false] %s2927_s17 }
 0xa80   : > { %p2925_p13 = pnand %p2924_p11, %p3208_p2  ;;  %s2929_s12 = scalar_lea.vmem %s2928_s17, 256 }
 0xa81   : > { %p2930_p1 = scmp.lt.s32.totalorder %s1927_s23, %s2928_s17  ;;  %p2931_p3 = scmp.lt.s32.totalorder %s2929_s12, %s2923_s20 }
 0xa82   : > { %p2926_p4 = pneg %p2925_p13 }
 0xa83   : > { %p2932_p9 = por %p2931_p3, %p2930_p1 }
 0xa85   : > { %p2933_p10 = pnand %p2932_p9, %p2926_p4 }
 0xaf6   : > { %v1900_v28 = vpop.xlane.xlu1 %1899 }
 0xaf7   : > { %v1901_v35 = vmul.f32 0.015625, %v1900_v28 }
 0xaf9   : > { %v1902_v36 = vadd.f32 1e-05, %v1901_v35 }
 0xafb   : > { %2735 = vrsqrt.f32 %v1902_v36 }
 0xb08   : > { %v2736_v37 = vpop.eup %2735 }
 0xb09   : > { %v1904_v38 = vmul.f32 %v2736_v37, %v1896_v32 }
 0xb0b   : > { %1905 = vst.msk [vmem:[%s504_s26] sm:$0xff] %vm571_vm1, %v1904_v38 }
 0xb0c   : > { %2936 = shalt.err (!%p2933_p10)
}
 0xb0d   : > { %s2937_s6 = scalar_lea.hbm %s1924_s28, 128  ;;  %s2941_s29 = scalar_lea.hbm %s3553_s8, 256 }
 0xb0e   : > { %p2938_p7 = scmp.ne.s32.totalorder %s1924_s28, %s2937_s6  ;;  %p2942_p6 = scmp.lt.s32.totalorder %s1924_s28, %s3553_s8 }
 0xb0f   : > { %p2943_p5 = scmp.lt.s32.totalorder %s2941_s29, %s2937_s6 }
 0xb10   : > { %p2939_p12 = pnand %p2938_p7, %p3208_p2 }
 0xb11   : > { %p2944_p11 = por %p2943_p5, %p2942_p6 }
 0xb12   : > { %p2940_p0 = pneg %p2939_p12 }
 0xb14   : > { %p2945_p13 = pnand %p2944_p11, %p2940_p0 }
 0xb16   : > { %2948 = shalt.err (!%p2945_p13)
}
 0xb17   : > { %2561 = dma.vmem_to_hbm [thread:$0]  (%p3208_p2), %s1927_s23, 128, %s1924_s28, %s1907_s19  }
 0xb18 PF: > { %s1955_s13 = sand.u32 1, %s3003_s30   ;;  %p3583_p4 = scmp.ge.s32.totalorder %s3023_s14, 2 }
 0xb19   : > { %s1956_s7 = scalar_lea.sflag [#allocation6], %s1955_s13 }
 0xb1a   : > { %p2586_p1 = pnand %p3583_p4, %p3215_p8 }
 0xb1c   : > { %p2587_p3 = pneg %p2586_p1 }
 0xb1e   : > { %2994 = dma.done.wait (%p2587_p3), %s1956_s7, 128  }
 0xb1f   : > { %2996 = vsyncadd (%p2587_p3), %s1956_s7, 4294967168  ;;  %s1965_s16 = scalar_lea.sflag [#allocation17], %s1955_s13 }
 0xb20   : > { %2998 = dma.done.wait (%p2587_p3), %s1965_s16, 192  }
 0xb21   : > { %3000 = vsyncadd (%p2587_p3), %s1965_s16, 4294967104  ;;  %s34_s14 = sadd.s32 1, %s3023_s14   ;;  %s3584_s12 = sld [smem:[#allocation25_spill]] }
 0xb22   : > { %p31_p9 = scmp.ge.s32.totalorder %s34_s14, 4   ;;  %s3585_s13 = sld [smem:[#allocation26_spill]] }
 0xb23   : > { %s3586_s30 = smov %s3007_s10  ;;  %s3587_s10 = smov %s3011_s11 }
 0xb24   : > { %s3588_s11 = smov %s3213_s24  ;;  %33 = sbr.rel (!%p31_p9) target bundleno = 18 (0x12), region = 171 }
 0xb29   :  { %1970 = vsyncpa [#allocation5], 1 }
 0xb2a   :  { %1972 = vsyncpa [#allocation5 + $0x1], 1 }
 0xb2b   :  { %1973 = vsyncpa [#allocation8], 1 }
 0xb2c   :  { %1975 = vsyncpa [#allocation8 + $0x1], 1 }
 0xb2d   :  { %1976 = vsyncpa [#allocation11], 1 }
 0xb2e   :  { %1977 = vsyncpa [#allocation14], 1 }
 0xb2f   :  { %1978 = vsyncpa [#allocation6], 1 }
 0xb30   :  { %1980 = vsyncpa [#allocation6 + $0x1], 1 }
 0xb31   :  { %1981 = vsyncpa [#allocation17], 1 }
 0xb32   :  { %1983 = vsyncpa [#allocation17 + $0x1], 1 }

</bundles_post_ra>
